<compile_context>
chip_gen: v5e
topology: v5e:2x2
jax: 0.10.0
libtpu: 0.0.40
codegen_flags: <defaults>
</compile_context>

<pallas_src>
import functools

import jax
import jax.numpy as jnp
from jax.experimental import pallas as pl
from jax.experimental.pallas import tpu as pltpu


# ----------------------------------------------------------------------------
# Pallas kernel: Nb batch elements x one TP-wide output-pixel slab
# ----------------------------------------------------------------------------
def _warp_kernel(base_ref, src_ref, x_ref, flow_ref, o_ref,
                 *, C, H, W, HW, TP, Nb, align):
    """base_ref: (2, TP)     rows = [gx_base, gy_base] for the TP output pixels
       src_ref:  (HW, 2)     cols = [src_x, src_y] for every source pixel (resident)
       x_ref:    (Nb*C, HW)  source pixels for the Nb batch elements (resident over t)
       flow_ref: (Nb*2, TP)  flow for those elements / output pixels
       o_ref:    (Nb*C, TP)
    """
    # ---- loop-invariant values (computed once per grid step) ----
    gx_base = base_ref[pl.ds(0, 1), :]                     # (1, TP)
    gy_base = base_ref[pl.ds(1, 1), :]                     # (1, TP)
    # Pre-broadcast source coordinates so the lane-splat is not re-emitted
    # inside the unrolled per-element loop (JAX does not CSE broadcasts).
    qx = jnp.broadcast_to(src_ref[:, 0:1], (HW, TP))       # (HW, TP)
    qy = jnp.broadcast_to(src_ref[:, 1:2], (HW, TP))       # (HW, TP)

    if align:
        ax_x, bx_x = 0.5 * (W - 1), 0.0
        ax_y, bx_y = 0.5 * (H - 1), 0.0
    else:
        ax_x, bx_x = 0.5 * W, -0.5
        ax_y, bx_y = 0.5 * H, -0.5

    # Static unroll over the Nb (<= 8) batch elements packed in this block.
    # A Python loop keeps every Ref slice static (no dynamic, unaligned
    # sublane offsets), which is what an unrolled fori_loop would need anyway.
    for n in range(Nb):
        # grid = clip(base_grid + flow, -1, 1), then un-normalize to pixel coords.
        gx = jnp.clip(gx_base + flow_ref[pl.ds(2 * n, 1), :], -1.0, 1.0)
        gy = jnp.clip(gy_base + flow_ref[pl.ds(2 * n + 1, 1), :], -1.0, 1.0)
        ix = (gx + 1.0) * ax_x + bx_x                      # (1, TP) sample x
        iy = (gy + 1.0) * ax_y + bx_y                      # (1, TP) sample y

        # Separable bilinear "tent" weights: the weight of source pixel
        # (qy, qx) for a sample at (iy, ix) is relu(1-|qx-ix|)*relu(1-|qy-iy|).
        # Only in-bounds source pixels exist as rows, so grid_sample's zeros
        # padding is automatic (no floor, no corner validity masks, no
        # integer-index compares).
        tx = jnp.maximum(1.0 - jnp.abs(qx - ix), 0.0)      # (HW, TP)
        ty = jnp.maximum(1.0 - jnp.abs(qy - iy), 0.0)      # (HW, TP)
        s_t = tx * ty                                      # sampling matrix S^T

        # out[c, p] = sum_q x[c, q] * S^T[q, p] -- MXU matmul, lane-dense in p.
        xr = x_ref[pl.ds(n * C, C), :]                     # (C, HW)
        out = jnp.dot(xr, s_t, preferred_element_type=jnp.float32)
        o_ref[pl.ds(n * C, C), :] = out.astype(o_ref.dtype)


# ----------------------------------------------------------------------------
# Wrapper
# ----------------------------------------------------------------------------
def warping_layer(x, flow, align):
    """x: (N, C, H, W), flow: (N, 2, H, W) normalized-coord flow -> (N, C, H, W)."""
    N, C, H, W = x.shape
    assert flow.shape == (N, 2, H, W)
    HW = H * W

    # ---- batch elements per grid step (amortize ~0.35us per-step cost) ----
    # Prefer Nb so that Nb*C and Nb*2 are multiples of 8 (or span the full
    # array) -> unmasked sublane-aligned blocks.
    Nb = N
    if N > 8:
        for d in range(1, 9):
            if N % d == 0 and d % 4 == 0 and (d * C) % 8 == 0:
                Nb = d  # largest aligned divisor <= 8 wins
        # TODO(synk): pad N when no aligned divisor exists (Nb falls back to N).

    # ---- output-pixel slab width: bounds the (HW, TP) temporaries in VMEM ----
    budget = max(128 * 1024, (2 * 1024 * 1024) // Nb)      # bytes per (HW,TP) f32
    TP = HW
    if HW * TP * 4 > budget:
        divs = [c for c in (2048, 1024, 512, 256, 128) if HW % c == 0]
        if divs:
            fit = [c for c in divs if HW * c * 4 <= budget]
            TP = fit[0] if fit else divs[-1]
        # else: HW not 128-divisible; keep TP=HW (single slab).

    # ---- 2-D lane-dense layouts: dense (8,128) tiles, unmasked writeback ----
    x2 = x.reshape(N * C, HW)
    f2 = flow.reshape(N * 2, HW)

    # Static tables hoisted out of the kernel (resident across the grid):
    #   base[0/1, p] = normalized x/y of output pixel p (torch.linspace grid)
    #   src[q, 0/1]  = integer x/y of source pixel q
    wlin = jnp.linspace(-1.0, 1.0, W, dtype=jnp.float32)
    hlin = jnp.linspace(-1.0, 1.0, H, dtype=jnp.float32)
    base = jnp.stack([jnp.tile(wlin, H), jnp.repeat(hlin, W)], axis=0)          # (2, HW)
    src = jnp.stack([jnp.tile(jnp.arange(W, dtype=jnp.float32), H),
                     jnp.repeat(jnp.arange(H, dtype=jnp.float32), W)], axis=1)  # (HW, 2)

    kern = functools.partial(_warp_kernel, C=C, H=H, W=W, HW=HW, TP=TP, Nb=Nb,
                             align=bool(align))
    out = pl.pallas_call(
        kern,
        out_shape=jax.ShapeDtypeStruct((N * C, HW), x.dtype),
        grid=(N // Nb, HW // TP),
        in_specs=[
            pl.BlockSpec((2, TP), lambda n, t: (0, t)),        # base-grid slab
            pl.BlockSpec((HW, 2), lambda n, t: (0, 0)),        # src coords (resident)
            pl.BlockSpec((Nb * C, HW), lambda n, t: (n, 0)),   # x (resident over t)
            pl.BlockSpec((Nb * 2, TP), lambda n, t: (n, t)),   # flow slab
        ],
        out_specs=pl.BlockSpec((Nb * C, TP), lambda n, t: (n, t)),
        compiler_params=pltpu.CompilerParams(
            dimension_semantics=("parallel", "parallel")),
    )(base, src, x2, f2)
    return out.reshape(N, C, H, W)


# ----------------------------------------------------------------------------
# Pure-JAX reference (gather-based) for correctness checking
# ----------------------------------------------------------------------------
def warping_layer_ref(x, flow, align):
    N, C, H, W = x.shape
    gx_b = jnp.broadcast_to(jnp.linspace(-1.0, 1.0, W)[None, None, None, :],
                            (N, 1, H, W))
    gy_b = jnp.broadcast_to(jnp.linspace(-1.0, 1.0, H)[None, None, :, None],
                            (N, 1, H, W))
    grid = jnp.clip(jnp.concatenate([gx_b, gy_b], axis=1) + flow, -1.0, 1.0)
    gx, gy = grid[:, 0], grid[:, 1]                        # (N, H, W)
    if align:
        ix = (gx + 1.0) * 0.5 * (W - 1)
        iy = (gy + 1.0) * 0.5 * (H - 1)
    else:
        ix = ((gx + 1.0) * W - 1.0) * 0.5
        iy = ((gy + 1.0) * H - 1.0) * 0.5
    x0 = jnp.floor(ix).astype(jnp.int32)
    y0 = jnp.floor(iy).astype(jnp.int32)
    x1, y1 = x0 + 1, y0 + 1
    wx1 = ix - x0
    wx0 = 1.0 - wx1
    wy1 = iy - y0
    wy0 = 1.0 - wy1

    def gather(xn, yc, xc):
        valid = (xc >= 0) & (xc < W) & (yc >= 0) & (yc < H)
        v = xn[:, jnp.clip(yc, 0, H - 1), jnp.clip(xc, 0, W - 1)]
        return jnp.where(valid[None], v, 0.0)

    def per_n(xn, y0n, y1n, x0n, x1n, w00, w01, w10, w11):
        return (gather(xn, y0n, x0n) * w00[None]
                + gather(xn, y0n, x1n) * w01[None]
                + gather(xn, y1n, x0n) * w10[None]
                + gather(xn, y1n, x1n) * w11[None])

    return jax.vmap(per_n)(x, y0, y1, x0, x1,
                           wx0 * wy0, wx1 * wy0, wx0 * wy1, wx1 * wy1)


# ----------------------------------------------------------------------------
if __name__ == "__main__":
    key = jax.random.PRNGKey(0)
    kx, kf = jax.random.split(key)

    # (2,4,16,16): single grid step; (16,4,16,16): Nb=8, batched grid axis;
    # (4,4,32,32): exercises the output-pixel slab tiling (TP < HW).
    cases = [(2, 4, 16, 16), (16, 4, 16, 16), (4, 4, 32, 32)]
    for (N, C, H, W) in cases:
        kx, k1 = jax.random.split(kx)
        kf, k2 = jax.random.split(kf)
        x = jax.random.normal(k1, (N, C, H, W), jnp.float32)
        # flow in normalized [-1, 1] coordinate units (module convention)
        flow = 0.3 * jax.random.normal(k2, (N, 2, H, W), jnp.float32)
        for align in (True, False):
            out = jax.block_until_ready(warping_layer(x, flow, align))
            assert out.shape == (N, C, H, W)
            assert bool(jnp.all(jnp.isfinite(out)))
            ref = warping_layer_ref(x, flow, align)
            err = float(jnp.max(jnp.abs(out - ref)))
            assert jnp.allclose(out, ref, atol=1e-4, rtol=1e-4), \
                (N, C, H, W, align, err)

    print("KERNEL_OK")
</pallas_src>

<mosaic_0001>
module attributes {stable_mosaic.version = 11 : i64} {
  func.func @_warp_kernel(%arg0: i32, %arg1: i32, %arg2: memref<2x256xf32, #tpu.memory_space<vmem>>, %arg3: memref<256x2xf32, #tpu.memory_space<vmem>>, %arg4: memref<8x256xf32, #tpu.memory_space<vmem>>, %arg5: memref<4x256xf32, #tpu.memory_space<vmem>>, %arg6: memref<8x256xf32, #tpu.memory_space<vmem>>) attributes {dimension_semantics = [#tpu.dimension_semantics<parallel>, #tpu.dimension_semantics<parallel>], iteration_bounds = array<i64: 1, 1>, scalar_prefetch = 0 : i64, scratch_operands = 0 : i64, tpu.core_type = #tpu.core_type<tc>, window_params = [{transform_indices = @transform_0, window_bounds = array<i64: 2, 256>}, {pipeline_mode = #tpu.pipeline_mode<synchronous>, transform_indices = @transform_1, window_bounds = array<i64: 256, 2>}, {transform_indices = @transform_2, window_bounds = array<i64: 8, 256>}, {transform_indices = @transform_3, window_bounds = array<i64: 4, 256>}, {transform_indices = @transform_4, window_bounds = array<i64: 8, 256>}]} {
    %c0 = arith.constant 0 : index
    %c0_0 = arith.constant 0 : index
    %0 = vector.load %arg2[%c0, %c0_0] : memref<2x256xf32, #tpu.memory_space<vmem>>, vector<1x256xf32>
    %c1 = arith.constant 1 : index
    %c0_1 = arith.constant 0 : index
    %1 = vector.load %arg2[%c1, %c0_1] : memref<2x256xf32, #tpu.memory_space<vmem>>, vector<1x256xf32>
    %c0_2 = arith.constant 0 : index
    %c0_3 = arith.constant 0 : index
    %2 = vector.load %arg3[%c0_2, %c0_3] : memref<256x2xf32, #tpu.memory_space<vmem>>, vector<256x1xf32>
    %3 = vector.shape_cast %2 : vector<256x1xf32> to vector<256x1xf32>
    %4 = vector.broadcast %3 : vector<256x1xf32> to vector<256x256xf32>
    %c0_4 = arith.constant 0 : index
    %c1_5 = arith.constant 1 : index
    %5 = vector.load %arg3[%c0_4, %c1_5] : memref<256x2xf32, #tpu.memory_space<vmem>>, vector<256x1xf32>
    %6 = vector.shape_cast %5 : vector<256x1xf32> to vector<256x1xf32>
    %7 = vector.broadcast %6 : vector<256x1xf32> to vector<256x256xf32>
    %c0_6 = arith.constant 0 : index
    %c0_7 = arith.constant 0 : index
    %8 = vector.load %arg5[%c0_6, %c0_7] : memref<4x256xf32, #tpu.memory_space<vmem>>, vector<1x256xf32>
    %9 = arith.addf %0, %8 : vector<1x256xf32>
    %cst = arith.constant -1.000000e+00 : f32
    %cst_8 = arith.constant 1.000000e+00 : f32
    %10 = vector.broadcast %cst : f32 to vector<1x256xf32>
    %11 = arith.maximumf %10, %9 : vector<1x256xf32>
    %12 = vector.broadcast %cst_8 : f32 to vector<1x256xf32>
    %13 = arith.minimumf %12, %11 : vector<1x256xf32>
    %c1_9 = arith.constant 1 : index
    %c0_10 = arith.constant 0 : index
    %14 = vector.load %arg5[%c1_9, %c0_10] : memref<4x256xf32, #tpu.memory_space<vmem>>, vector<1x256xf32>
    %15 = arith.addf %1, %14 : vector<1x256xf32>
    %cst_11 = arith.constant -1.000000e+00 : f32
    %cst_12 = arith.constant 1.000000e+00 : f32
    %16 = vector.broadcast %cst_11 : f32 to vector<1x256xf32>
    %17 = arith.maximumf %16, %15 : vector<1x256xf32>
    %18 = vector.broadcast %cst_12 : f32 to vector<1x256xf32>
    %19 = arith.minimumf %18, %17 : vector<1x256xf32>
    %cst_13 = arith.constant 1.000000e+00 : f32
    %20 = vector.broadcast %cst_13 : f32 to vector<1x256xf32>
    %21 = arith.addf %13, %20 : vector<1x256xf32>
    %cst_14 = arith.constant 7.500000e+00 : f32
    %22 = vector.broadcast %cst_14 : f32 to vector<1x256xf32>
    %23 = arith.mulf %21, %22 : vector<1x256xf32>
    %cst_15 = arith.constant 0.000000e+00 : f32
    %24 = vector.broadcast %cst_15 : f32 to vector<1x256xf32>
    %25 = arith.addf %23, %24 : vector<1x256xf32>
    %cst_16 = arith.constant 1.000000e+00 : f32
    %26 = vector.broadcast %cst_16 : f32 to vector<1x256xf32>
    %27 = arith.addf %19, %26 : vector<1x256xf32>
    %cst_17 = arith.constant 7.500000e+00 : f32
    %28 = vector.broadcast %cst_17 : f32 to vector<1x256xf32>
    %29 = arith.mulf %27, %28 : vector<1x256xf32>
    %cst_18 = arith.constant 0.000000e+00 : f32
    %30 = vector.broadcast %cst_18 : f32 to vector<1x256xf32>
    %31 = arith.addf %29, %30 : vector<1x256xf32>
    %32 = vector.broadcast %25 : vector<1x256xf32> to vector<256x256xf32>
    %33 = arith.subf %4, %32 : vector<256x256xf32>
    %34 = math.absf %33 : vector<256x256xf32>
    %cst_19 = arith.constant 1.000000e+00 : f32
    %35 = vector.broadcast %cst_19 : f32 to vector<256x256xf32>
    %36 = arith.subf %35, %34 : vector<256x256xf32>
    %cst_20 = arith.constant 0.000000e+00 : f32
    %37 = vector.broadcast %cst_20 : f32 to vector<256x256xf32>
    %38 = arith.maximumf %36, %37 : vector<256x256xf32>
    %39 = vector.broadcast %31 : vector<1x256xf32> to vector<256x256xf32>
    %40 = arith.subf %7, %39 : vector<256x256xf32>
    %41 = math.absf %40 : vector<256x256xf32>
    %cst_21 = arith.constant 1.000000e+00 : f32
    %42 = vector.broadcast %cst_21 : f32 to vector<256x256xf32>
    %43 = arith.subf %42, %41 : vector<256x256xf32>
    %cst_22 = arith.constant 0.000000e+00 : f32
    %44 = vector.broadcast %cst_22 : f32 to vector<256x256xf32>
    %45 = arith.maximumf %43, %44 : vector<256x256xf32>
    %46 = arith.mulf %38, %45 : vector<256x256xf32>
    %c0_23 = arith.constant 0 : index
    %c0_24 = arith.constant 0 : index
    %47 = vector.load %arg4[%c0_23, %c0_24] : memref<8x256xf32, #tpu.memory_space<vmem>>, vector<4x256xf32>
    %cst_25 = arith.constant dense<0.000000e+00> : vector<4x256xf32>
    %48 = tpu.matmul %47, %46, %cst_25 {dimension_numbers = #tpu.dot_dimension_numbers<[1], [0], [0], [1], [0, 0, 1, 1], [], []>} : vector<4x256xf32>, vector<256x256xf32>, vector<4x256xf32> -> vector<4x256xf32>
    %c0_26 = arith.constant 0 : index
    %c0_27 = arith.constant 0 : index
    %49 = vector.load %arg6[%c0_26, %c0_27] : memref<8x256xf32, #tpu.memory_space<vmem>>, vector<4x256xf32>
    tpu.vector_store %arg6[%c0_26, %c0_27], %48 {strides = array<i32>} : memref<8x256xf32, #tpu.memory_space<vmem>>, vector<4x256xf32>,
    %c2 = arith.constant 2 : index
    %c0_28 = arith.constant 0 : index
    %50 = vector.load %arg5[%c2, %c0_28] : memref<4x256xf32, #tpu.memory_space<vmem>>, vector<1x256xf32>
    %51 = arith.addf %0, %50 : vector<1x256xf32>
    %cst_29 = arith.constant -1.000000e+00 : f32
    %cst_30 = arith.constant 1.000000e+00 : f32
    %52 = vector.broadcast %cst_29 : f32 to vector<1x256xf32>
    %53 = arith.maximumf %52, %51 : vector<1x256xf32>
    %54 = vector.broadcast %cst_30 : f32 to vector<1x256xf32>
    %55 = arith.minimumf %54, %53 : vector<1x256xf32>
    %c3 = arith.constant 3 : index
    %c0_31 = arith.constant 0 : index
    %56 = vector.load %arg5[%c3, %c0_31] : memref<4x256xf32, #tpu.memory_space<vmem>>, vector<1x256xf32>
    %57 = arith.addf %1, %56 : vector<1x256xf32>
    %cst_32 = arith.constant -1.000000e+00 : f32
    %cst_33 = arith.constant 1.000000e+00 : f32
    %58 = vector.broadcast %cst_32 : f32 to vector<1x256xf32>
    %59 = arith.maximumf %58, %57 : vector<1x256xf32>
    %60 = vector.broadcast %cst_33 : f32 to vector<1x256xf32>
    %61 = arith.minimumf %60, %59 : vector<1x256xf32>
    %cst_34 = arith.constant 1.000000e+00 : f32
    %62 = vector.broadcast %cst_34 : f32 to vector<1x256xf32>
    %63 = arith.addf %55, %62 : vector<1x256xf32>
    %cst_35 = arith.constant 7.500000e+00 : f32
    %64 = vector.broadcast %cst_35 : f32 to vector<1x256xf32>
    %65 = arith.mulf %63, %64 : vector<1x256xf32>
    %cst_36 = arith.constant 0.000000e+00 : f32
    %66 = vector.broadcast %cst_36 : f32 to vector<1x256xf32>
    %67 = arith.addf %65, %66 : vector<1x256xf32>
    %cst_37 = arith.constant 1.000000e+00 : f32
    %68 = vector.broadcast %cst_37 : f32 to vector<1x256xf32>
    %69 = arith.addf %61, %68 : vector<1x256xf32>
    %cst_38 = arith.constant 7.500000e+00 : f32
    %70 = vector.broadcast %cst_38 : f32 to vector<1x256xf32>
    %71 = arith.mulf %69, %70 : vector<1x256xf32>
    %cst_39 = arith.constant 0.000000e+00 : f32
    %72 = vector.broadcast %cst_39 : f32 to vector<1x256xf32>
    %73 = arith.addf %71, %72 : vector<1x256xf32>
    %74 = vector.broadcast %67 : vector<1x256xf32> to vector<256x256xf32>
    %75 = arith.subf %4, %74 : vector<256x256xf32>
    %76 = math.absf %75 : vector<256x256xf32>
    %cst_40 = arith.constant 1.000000e+00 : f32
    %77 = vector.broadcast %cst_40 : f32 to vector<256x256xf32>
    %78 = arith.subf %77, %76 : vector<256x256xf32>
    %cst_41 = arith.constant 0.000000e+00 : f32
    %79 = vector.broadcast %cst_41 : f32 to vector<256x256xf32>
    %80 = arith.maximumf %78, %79 : vector<256x256xf32>
    %81 = vector.broadcast %73 : vector<1x256xf32> to vector<256x256xf32>
    %82 = arith.subf %7, %81 : vector<256x256xf32>
    %83 = math.absf %82 : vector<256x256xf32>
    %cst_42 = arith.constant 1.000000e+00 : f32
    %84 = vector.broadcast %cst_42 : f32 to vector<256x256xf32>
    %85 = arith.subf %84, %83 : vector<256x256xf32>
    %cst_43 = arith.constant 0.000000e+00 : f32
    %86 = vector.broadcast %cst_43 : f32 to vector<256x256xf32>
    %87 = arith.maximumf %85, %86 : vector<256x256xf32>
    %88 = arith.mulf %80, %87 : vector<256x256xf32>
    %c4 = arith.constant 4 : index
    %c0_44 = arith.constant 0 : index
    %89 = vector.load %arg4[%c4, %c0_44] : memref<8x256xf32, #tpu.memory_space<vmem>>, vector<4x256xf32>
    %cst_45 = arith.constant dense<0.000000e+00> : vector<4x256xf32>
    %90 = tpu.matmul %89, %88, %cst_45 {dimension_numbers = #tpu.dot_dimension_numbers<[1], [0], [0], [1], [0, 0, 1, 1], [], []>} : vector<4x256xf32>, vector<256x256xf32>, vector<4x256xf32> -> vector<4x256xf32>
    %c4_46 = arith.constant 4 : index
    %c0_47 = arith.constant 0 : index
    %91 = vector.load %arg6[%c4_46, %c0_47] : memref<8x256xf32, #tpu.memory_space<vmem>>, vector<4x256xf32>
    tpu.vector_store %arg6[%c4_46, %c0_47], %90 {strides = array<i32>} : memref<8x256xf32, #tpu.memory_space<vmem>>, vector<4x256xf32>,
    return
  }
  func.func @transform_0(%arg0: i32, %arg1: i32) -> (i32, i32) {
    %c0_i32 = arith.constant 0 : i32
    %c0_i32_0 = arith.constant 0 : i32
    return %c0_i32, %arg1 : i32, i32
  }
  func.func @transform_1(%arg0: i32, %arg1: i32) -> (i32, i32) {
    %c0_i32 = arith.constant 0 : i32
    %c0_i32_0 = arith.constant 0 : i32
    %c0_i32_1 = arith.constant 0 : i32
    return %c0_i32, %c0_i32_0 : i32, i32
  }
  func.func @transform_2(%arg0: i32, %arg1: i32) -> (i32, i32) {
    %c0_i32 = arith.constant 0 : i32
    %c0_i32_0 = arith.constant 0 : i32
    return %arg0, %c0_i32 : i32, i32
  }
  func.func @transform_3(%arg0: i32, %arg1: i32) -> (i32, i32) {
    %c0_i32 = arith.constant 0 : i32
    return %arg0, %arg1 : i32, i32
  }
  func.func @transform_4(%arg0: i32, %arg1: i32) -> (i32, i32) {
    %c0_i32 = arith.constant 0 : i32
    return %arg0, %arg1 : i32, i32
  }
}

</mosaic_0001>

<bundles_post_ra>
// kernel: tpu_custom_call.1
= control target key start
LH: loop header
LB: loop body
LE: loop exit
PB: predicated region body
PF: predicated region fallthrough
CT: control target
= control target key end

     0   :  { %v1783_v3 = vmov 0   ;;  %s2951_s0 = inlined_call_operand.vmem [shape: f32[2,256], index: 0, kind: input, shape index: {}]   ;;  %s2952_s1 = inlined_call_operand.vmem [shape: f32[256,2], index: 1, kind: input, shape index: {}]   ;;  %s2953_s2 = inlined_call_operand.vmem [shape: f32[8,256], index: 2, kind: input, shape index: {}]   ;;  %s2954_s3 = inlined_call_operand.vmem [shape: f32[4,256], index: 3, kind: input, shape index: {}]   ;;  %s2955_s4 = inlined_call_operand.hbm [shape: f32[8,256], index: 4, kind: output, shape index: {}]  }
   0x1   :  { %v1814_v0 = vld [vmem:[%s2952_s1 + $0x20] sm:$0xff]  ;;  %v1819_v1 = vld [vmem:[%s2952_s1 + $0x10] sm:$0xff]  ;;  %1753 = vset.pattern.permute.xlu2 %v1783_v3  ;;  %1752 = vset.pattern.permute.xlu1 %v1783_v3 }
   0x2   :  { %v1824_v2 = vld [vmem:[%s2952_s1] sm:$0xff]  ;;  %1751 = vset.pattern.permute.xlu0 %v1783_v3  ;;  %75 = vperm.xlu2 %1753, %v1814_v0  }
   0x3   :  { %65 = vperm.xlu1 %1752, %v1819_v1   ;;  %55 = vperm.xlu0 %1751, %v1824_v2  }
   0x4   :  { %9 = vsyncpa [#allocation3], 0  ;;  %v1832_v4 = vld [vmem:[%s2952_s1 + $0x28] sm:$0xff]  ;;  %v1837_v5 = vld [vmem:[%s2952_s1 + $0x18] sm:$0xff]  ;;  %v1784_v29 = vmov 1   ;;  %s1731_s21 = sshll.u32 %s2955_s4, 4  ;;  %s1732_s21 = int_to_ptr.hbm [resolvable:$true] %s1731_s21 }
   0x5   :  { %v1842_v6 = vld [vmem:[%s2952_s1 + $0x8] sm:$0xff]  ;;  %v1850_v7 = vld [vmem:[%s2952_s1 + $0x40] sm:$0xff]  ;;  %v1855_v8 = vld [vmem:[%s2952_s1 + $0x38] sm:$0xff] }
   0x6   :  { %v1860_v9 = vld [vmem:[%s2952_s1 + $0x30] sm:$0xff]  ;;  %v1868_v10 = vld [vmem:[%s2952_s1 + $0x58] sm:$0xff]  ;;  %v1878_v12 = vld [vmem:[%s2952_s1 + $0x48] sm:$0xff] }
   0x7   :  { %v1873_v11 = vld [vmem:[%s2952_s1 + $0x50] sm:$0xff]  ;;  %v34_v14 = vld [vmem:[%s2952_s1 + $0x68] sm:$0xff]  ;;  %v33_v15 = vld [vmem:[%s2952_s1 + $0x60] sm:$0xff] }
   0x8   :  { %v35_v13 = vld [vmem:[%s2952_s1 + $0x70] sm:$0xff]  ;;  %v1895_v16 = vld [vmem:[%s2952_s1 + $0x88] sm:$0xff]  ;;  %v1900_v17 = vld [vmem:[%s2952_s1 + $0x80] sm:$0xff] }
   0x9   :  { %v36_v18 = vld [vmem:[%s2952_s1 + $0x78] sm:$0xff]  ;;  %v1910_v19 = vld [vmem:[%s2952_s1 + $0xa0] sm:$0xff]  ;;  %v1920_v21 = vld [vmem:[%s2952_s1 + $0x90] sm:$0xff] }
   0xa   :  { %80 = vperm.xlu2 %1753, %v1832_v4   ;;  %v1915_v20 = vld [vmem:[%s2952_s1 + $0x98] sm:$0xff]  ;;  %v1933_v23 = vld [vmem:[%s2952_s1 + $0xb0] sm:$0xff]  ;;  %v1938_v24 = vld [vmem:[%s2952_s1 + $0xa8] sm:$0xff] }
   0xb   :  { %70 = vperm.xlu1 %1752, %v1837_v5   ;;  %60 = vperm.xlu0 %1751, %v1842_v6   ;;  %v1928_v22 = vld [vmem:[%s2952_s1 + $0xb8] sm:$0xff]  ;;  %v47_v25 = vld [vmem:[%s2952_s1 + $0xd0] sm:$0xff]  ;;  %v1949_v26 = vld [vmem:[%s2952_s1 + $0xc8] sm:$0xff] }
   0xc   :  { %v1954_v27 = vld [vmem:[%s2952_s1 + $0xc0] sm:$0xff]  ;;  %v52_v28 = vld [vmem:[%s2952_s1 + $0xf8] sm:$0xff]  ;;  %v51_v30 = vld [vmem:[%s2952_s1 + $0xf0] sm:$0xff] }
   0xd   :  { %v50_v31 = vld [vmem:[%s2952_s1 + $0xe8] sm:$0xff]  ;;  %v18_v32 = vld [vmem:[%s2951_s0] ss:$2 sm:$0x3]  ;;  %v48_v41 = vld [vmem:[%s2952_s1 + $0xd8] sm:$0xff] }
   0xe   :  { %v341_v33 = vld [vmem:[%s2954_s3] ss:$4 sm:$0x3]  ;;  %v1744_v40 = vld [vmem:[%s2954_s3 + $0x2] ss:$4 sm:$0x3] }
   0xf   :  { %v342_v35 = vadd.f32 %v341_v33, %v18_v32  ;;  %v49_v36 = vld [vmem:[%s2952_s1 + $0xe0] sm:$0xff]  ;;  %v1028_v43 = vadd.f32 %v1744_v40, %v18_v32 }
  0x11   :  { %v1741_v37 = vclamps-f32 %v342_v35, 1.0  ;;  %v1745_v47 = vclamps-f32 %v1028_v43, 1.0 }
  0x12   :  { %95 = vperm.xlu2 %1753, %v1850_v7  }
  0x13   :  { %90 = vperm.xlu1 %1752, %v1855_v8   ;;  %85 = vperm.xlu0 %1751, %v1860_v9   ;;  %v350_v39 = vadd.f32 1.0, %v1741_v37  ;;  %v1036_v51 = vadd.f32 1.0, %v1745_v47 }
  0x15   :  { %v351_v42 = vmul.f32 7.5, %v350_v39  ;;  %v1037_v63 = vmul.f32 7.5, %v1036_v51 }
  0x17   :  { %v1989_v45 = vperm.slane %v351_v42, 0  ;;  %v1991_v46 = vperm.slane %v351_v42, 1  ;;  %v2029_v35 = vperm.slane %v1037_v63, 1 }
  0x19   :  { %3039 = vst [vmem:[#allocation13_spill] sm:$0xff] %v2029_v35 }
  0x1a   :  { %110 = vperm.xlu2 %1753, %v1868_v10  }
  0x1b   :  { %105 = vperm.xlu1 %1752, %v1873_v11   ;;  %100 = vperm.xlu0 %1751, %v1878_v12  }
  0x22   :  { %125 = vperm.xlu2 %1753, %v35_v13  }
  0x23   :  { %120 = vperm.xlu1 %1752, %v34_v14   ;;  %115 = vperm.xlu0 %1751, %v33_v15  }
  0x2a   :  { %140 = vperm.xlu2 %1753, %v1895_v16  }
  0x2b   :  { %135 = vperm.xlu1 %1752, %v1900_v17   ;;  %130 = vperm.xlu0 %1751, %v36_v18  }
  0x32   :  { %155 = vperm.xlu2 %1753, %v1910_v19  }
  0x33   :  { %150 = vperm.xlu1 %1752, %v1915_v20   ;;  %145 = vperm.xlu0 %1751, %v1920_v21  }
  0x3a   :  { %170 = vperm.xlu2 %1753, %v1928_v22  }
  0x3b   :  { %165 = vperm.xlu1 %1752, %v1933_v23   ;;  %160 = vperm.xlu0 %1751, %v1938_v24  }
  0x42   :  { %185 = vperm.xlu2 %1753, %v47_v25  }
  0x43   :  { %180 = vperm.xlu1 %1752, %v1949_v26   ;;  %175 = vperm.xlu0 %1751, %v1954_v27  }
  0x4a   :  { %1755 = vset.pattern.permute.xlu2 %v1784_v29 }
  0x4b   :  { %1754 = vset.pattern.permute.xlu1 %v1784_v29  ;;  %210 = vperm.xlu0 %1751, %v52_v28  }
  0x4c   :  { %338 = vperm.xlu2 %1755, %v52_v28   ;;  %274 = vperm.xlu1 %1754, %v36_v18  }
  0x53   :  { %205 = vperm.xlu0 %1751, %v51_v30  }
  0x54   :  { %334 = vperm.xlu2 %1755, %v51_v30   ;;  %270 = vperm.xlu1 %1754, %v35_v13   ;;  %v2023_v30 = vperm.slane %v1037_v63, 0 }
  0x56   :  { %3037 = vst [vmem:[#allocation11_spill] sm:$0xff] %v2023_v30 }
  0x5b   :  { %200 = vperm.xlu0 %1751, %v50_v31  }
  0x5c   :  { %330 = vperm.xlu2 %1755, %v50_v31   ;;  %266 = vperm.xlu1 %1754, %v34_v14   ;;  %v1973_v34 = vpop.permute.xlu2 %75 }
  0x5d   :  { %3031 = vst [vmem:[#allocation5_spill] sm:$0xff] %v1973_v34  ;;  %v369_v48 = vsub.f32 %v1973_v34, %v1989_v45  ;;  %v370_v50 = vsub.f32 %v1973_v34, %v1991_v46 }
  0x5f   :  { %v433_v53 = vand.u32 2147483647, %v369_v48  ;;  %v434_v56 = vand.u32 2147483647, %v370_v50 }
  0x63   :  { %195 = vperm.xlu0 %1751, %v49_v36  }
  0x64   :  { %326 = vperm.xlu2 %1755, %v49_v36   ;;  %262 = vperm.xlu1 %1754, %v33_v15   ;;  %v1978_v38 = vpop.permute.xlu2 %80 }
  0x65   :  { %3032 = vst [vmem:[#allocation6_spill] sm:$0xff] %v1978_v38  ;;  %v371_v49 = vsub.f32 %v1978_v38, %v1989_v45  ;;  %v372_v52 = vsub.f32 %v1978_v38, %v1991_v46 }
  0x67   :  { %v435_v55 = vand.u32 2147483647, %v371_v49  ;;  %v436_v3 = vand.u32 2147483647, %v372_v52 }
  0x69   :  { %v500_v31 = vsub.f32 1.0, %v436_v3 }
  0x6b   :  { %190 = vperm.xlu0 %1751, %v48_v41  }
  0x6c   :  { %322 = vperm.xlu2 %1755, %v48_v41   ;;  %258 = vperm.xlu1 %1754, %v1868_v10   ;;  %v1987_v44 = vpop.permute.xlu2 %95  ;;  %v497_v10 = vsub.f32 1.0, %v433_v53  ;;  %v2045_v53 = vmax.f32 %v500_v31, 0.0 }
  0x6d   :  { %3033 = vst [vmem:[#allocation7_spill] sm:$0xff] %v1987_v44  ;;  %v377_v59 = vsub.f32 %v1987_v44, %v1989_v45  ;;  %v378_v60 = vsub.f32 %v1987_v44, %v1991_v46 }
  0x6e   :  { %v2025_v32 = vmax.f32 %v497_v10, 0.0  ;;  %3043 = vst [vmem:[#allocation17_spill] sm:$0xff] %v2045_v53 }
  0x6f   :  { %v441_v15 = vand.u32 2147483647, %v377_v59  ;;  %v442_v18 = vand.u32 2147483647, %v378_v60 }
  0x70   :  { %3038 = vst [vmem:[#allocation12_spill] sm:$0xff] %v2025_v32 }
  0x71   :  { %v506_v49 = vsub.f32 1.0, %v442_v18 }
  0x73   :  { %1756 = vset.pattern.permute.xlu0 %v1784_v29  ;;  %v2055_v10 = vmax.f32 %v506_v49, 0.0 }
  0x74   :  { %250 = vperm.xlu2 %1755, %v1878_v12   ;;  %318 = vperm.xlu1 %1754, %v47_v25   ;;  %v2002_v54 = vpop.permute.xlu2 %110  ;;  %v498_v12 = vsub.f32 1.0, %v434_v56 }
  0x75   :  { %3034 = vst [vmem:[#allocation8_spill] sm:$0xff] %v2002_v54  ;;  %254 = vperm.xlu0 %1756, %v1873_v11   ;;  %v2005_v57 = vpop.permute.xlu1 %65  ;;  %v2007_v58 = vpop.permute.xlu0 %55  ;;  %v383_v61 = vsub.f32 %v2002_v54, %v1989_v45  ;;  %v384_v62 = vsub.f32 %v2002_v54, %v1991_v46  ;;  %v499_v11 = vsub.f32 1.0, %v435_v55 }
  0x76   :  { %3035 = vst [vmem:[#allocation9_spill] sm:$0xff] %v2005_v57  ;;  %v365_v13 = vsub.f32 %v2005_v57, %v1989_v45  ;;  %v366_v14 = vsub.f32 %v2005_v57, %v1991_v46  ;;  %v361_v29 = vsub.f32 %v2007_v58, %v1989_v45  ;;  %v362_v33 = vsub.f32 %v2007_v58, %v1991_v46 }
  0x77   :  { %3036 = vst [vmem:[#allocation10_spill] sm:$0xff] %v2007_v58  ;;  %v447_v25 = vand.u32 2147483647, %v383_v61  ;;  %v448_v28 = vand.u32 2147483647, %v384_v62  ;;  %v2033_v37 = vmax.f32 %v499_v11, 0.0 }
  0x78   :  { %v2035_v39 = vmax.f32 %v498_v12, 0.0  ;;  %v429_v40 = vand.u32 2147483647, %v365_v13  ;;  %v430_v41 = vand.u32 2147483647, %v366_v14 }
  0x79   :  { %v512_v50 = vsub.f32 1.0, %v448_v28  ;;  %v425_v51 = vand.u32 2147483647, %v361_v29  ;;  %v426_v56 = vand.u32 2147483647, %v362_v33 }
  0x7a   :  { %3040 = vst [vmem:[#allocation14_spill] sm:$0xff] %v2035_v39  ;;  %v493_v60 = vsub.f32 1.0, %v429_v40  ;;  %v494_v61 = vsub.f32 1.0, %v430_v41 }
  0x7b   :  { %v2061_v13 = vmax.f32 %v512_v50, 0.0  ;;  %v489_v14 = vsub.f32 1.0, %v425_v51  ;;  %v490_v28 = vsub.f32 1.0, %v426_v56 }
  0x7c   :  { %246 = vperm.xlu2 %1755, %v1850_v7   ;;  %314 = vperm.xlu1 %1754, %v1949_v26   ;;  %v126_v36 = vpop.permute.xlu2 %125  ;;  %v505_v7 = vsub.f32 1.0, %v441_v15  ;;  %v511_v26 = vsub.f32 1.0, %v447_v25  ;;  %v2068_v40 = vmax.f32 %v493_v60, 0.0  ;;  %v2070_v41 = vmax.f32 %v494_v61, 0.0 }
  0x7d   :  { %310 = vperm.xlu0 %1756, %v1954_v27   ;;  %v2038_v42 = vpop.permute.xlu1 %70  ;;  %v2040_v43 = vpop.permute.xlu0 %60  ;;  %v389_v47 = vsub.f32 %v126_v36, %v1989_v45  ;;  %v390_v48 = vsub.f32 %v126_v36, %v1991_v46  ;;  %v1075_v52 = vsub.f32 %v126_v36, %v2023_v30  ;;  %v1076_v29 = vsub.f32 %v126_v36, %v2029_v35 }
  0x7e   :  { %3041 = vst [vmem:[#allocation15_spill] sm:$0xff] %v2038_v42  ;;  %v367_v27 = vsub.f32 %v2038_v42, %v1989_v45  ;;  %v368_v55 = vsub.f32 %v2038_v42, %v1991_v46  ;;  %v363_v62 = vsub.f32 %v2040_v43, %v1989_v45  ;;  %v2053_v3 = vmax.f32 %v505_v7, 0.0 }
  0x7f   :  { %3042 = vst [vmem:[#allocation16_spill] sm:$0xff] %v2040_v43  ;;  %v453_v59 = vand.u32 2147483647, %v389_v47  ;;  %v454_v63 = vand.u32 2147483647, %v390_v48  ;;  %v364_v11 = vsub.f32 %v2040_v43, %v1991_v46  ;;  %v2059_v12 = vmax.f32 %v511_v26, 0.0 }
  0x80   :  { %v1139_v15 = vand.u32 2147483647, %v1075_v52  ;;  %v431_v18 = vand.u32 2147483647, %v367_v27  ;;  %v432_v25 = vand.u32 2147483647, %v368_v55 }
  0x81   :  { %v517_v33 = vsub.f32 1.0, %v453_v59  ;;  %3045 = vst [vmem:[#allocation19_spill] sm:$0xff] %v2068_v40  ;;  %v427_v47 = vand.u32 2147483647, %v363_v62  ;;  %v518_v49 = vsub.f32 1.0, %v454_v63 }
  0x82   :  { %3046 = vst [vmem:[#allocation20_spill] sm:$0xff] %v2070_v41  ;;  %v428_v36 = vand.u32 2147483647, %v364_v11  ;;  %v1203_v51 = vsub.f32 1.0, %v1139_v15  ;;  %v495_v27 = vsub.f32 1.0, %v431_v18  ;;  %v496_v55 = vsub.f32 1.0, %v432_v25 }
  0x83   :  { %v1140_v56 = vand.u32 2147483647, %v1076_v29  ;;  %v2089_v11 = vmax.f32 %v489_v14, 0.0  ;;  %v2093_v58 = vmax.f32 %v517_v33, 0.0  ;;  %v2095_v43 = vmax.f32 %v518_v49, 0.0 }
  0x84   :  { %306 = vperm.xlu2 %1755, %v1928_v22   ;;  %242 = vperm.xlu1 %1754, %v1855_v8   ;;  %v2066_v31 = vpop.permute.xlu2 %140  ;;  %v491_v15 = vsub.f32 1.0, %v427_v47  ;;  %v492_v57 = vsub.f32 1.0, %v428_v36  ;;  %v2097_v34 = vmax.f32 %v495_v27, 0.0  ;;  %v2099_v18 = vmax.f32 %v496_v55, 0.0 }
  0x85   :  { %3044 = vst [vmem:[#allocation18_spill] sm:$0xff] %v2066_v31  ;;  %238 = vperm.xlu0 %1756, %v1860_v9   ;;  %v2073_v48 = vpop.permute.xlu1 %90  ;;  %v2075_v7 = vpop.permute.xlu0 %85  ;;  %v395_v22 = vsub.f32 %v2066_v31, %v1989_v45  ;;  %v396_v8 = vsub.f32 %v2066_v31, %v1991_v46  ;;  %v2091_v31 = vmax.f32 %v490_v28, 0.0  ;;  %v2101_v25 = vmax.f32 %v1203_v51, 0.0 }
  0x86   :  { %3047 = vst [vmem:[#allocation21_spill] sm:$0xff] %v2073_v48  ;;  %v375_v26 = vsub.f32 %v2073_v48, %v1989_v45  ;;  %v376_v50 = vsub.f32 %v2073_v48, %v1991_v46  ;;  %v373_v9 = vsub.f32 %v2075_v7, %v1989_v45  ;;  %v374_v52 = vsub.f32 %v2075_v7, %v1991_v46 }
  0x87   :  { %3048 = vst [vmem:[#allocation22_spill] sm:$0xff] %v2075_v7  ;;  %v459_v60 = vand.u32 2147483647, %v395_v22  ;;  %v460_v61 = vand.u32 2147483647, %v396_v8  ;;  %v1204_v49 = vsub.f32 1.0, %v1140_v56 }
  0x88   :  { %v439_v59 = vand.u32 2147483647, %v375_v26  ;;  %v440_v62 = vand.u32 2147483647, %v376_v50  ;;  %v437_v63 = vand.u32 2147483647, %v373_v9 }
  0x89   :  { %3049 = vst [vmem:[#allocation23_spill] sm:$0xff] %v2089_v11  ;;  %v438_v42 = vand.u32 2147483647, %v374_v52  ;;  %v523_v29 = vsub.f32 1.0, %v459_v60  ;;  %v524_v33 = vsub.f32 1.0, %v460_v61  ;;  %v2124_v55 = vmax.f32 %v491_v15, 0.0 }
  0x8a   :  { %3050 = vst [vmem:[#allocation24_spill] sm:$0xff] %v2091_v31  ;;  %v503_v28 = vsub.f32 1.0, %v439_v59  ;;  %v504_v8 = vsub.f32 1.0, %v440_v62  ;;  %v501_v36 = vsub.f32 1.0, %v437_v63  ;;  %v2128_v60 = vmax.f32 %v492_v57, 0.0 }
  0x8b   :  { %3051 = vst [vmem:[#allocation25_spill] sm:$0xff] %v2097_v34  ;;  %v502_v51 = vsub.f32 1.0, %v438_v42  ;;  %v2126_v59 = vmax.f32 %v523_v29, 0.0  ;;  %v2130_v61 = vmax.f32 %v1204_v49, 0.0  ;;  %v2138_v42 = vmax.f32 %v524_v33, 0.0 }
  0x8c   :  { %3052 = vst [vmem:[#allocation26_spill] sm:$0xff] %v2099_v18  ;;  %234 = vperm.xlu2 %1755, %v1832_v4   ;;  %302 = vperm.xlu1 %1754, %v1933_v23   ;;  %v2105_v14 = vpop.permute.xlu2 %155  ;;  %v2132_v38 = vmax.f32 %v503_v28, 0.0  ;;  %v2134_v7 = vmax.f32 %v504_v8, 0.0  ;;  %v2136_v48 = vmax.f32 %v501_v36, 0.0 }
  0x8d   :  { %3053 = vst [vmem:[#allocation27_spill] sm:$0xff] %v2105_v14  ;;  %298 = vperm.xlu0 %1756, %v1938_v24   ;;  %v2108_v47 = vpop.permute.xlu1 %105  ;;  %v2110_v22 = vpop.permute.xlu0 %100  ;;  %v401_v26 = vsub.f32 %v2105_v14, %v1989_v45  ;;  %v402_v4 = vsub.f32 %v2105_v14, %v1991_v46  ;;  %v1740_v28 = vld [vmem:[%s2951_s0 + $0x1] ss:$2 sm:$0x3] }
  0x8e   :  { %3054 = vst [vmem:[#allocation28_spill] sm:$0xff] %v2108_v47  ;;  %v381_v23 = vsub.f32 %v2108_v47, %v1989_v45  ;;  %v382_v50 = vsub.f32 %v2108_v47, %v1991_v46  ;;  %v379_v24 = vsub.f32 %v2110_v22, %v1989_v45  ;;  %v380_v9 = vsub.f32 %v2110_v22, %v1991_v46  ;;  %v1742_v33 = vld [vmem:[%s2954_s3 + $0x1] ss:$4 sm:$0x3] }
  0x8f   :  { %3055 = vst [vmem:[#allocation29_spill] sm:$0xff] %v2110_v22  ;;  %v465_v52 = vand.u32 2147483647, %v401_v26  ;;  %v466_v27 = vand.u32 2147483647, %v402_v4  ;;  %v2140_v26 = vmax.f32 %v502_v51, 0.0  ;;  %v347_v36 = vadd.f32 %v1742_v33, %v1740_v28 }
  0x90   :  { %3056 = vst [vmem:[#allocation30_spill] sm:$0xff] %v2124_v55  ;;  %v445_v56 = vand.u32 2147483647, %v381_v23  ;;  %v446_v62 = vand.u32 2147483647, %v382_v50 }
  0x91   :  { %3057 = vst [vmem:[#allocation31_spill] sm:$0xff] %v2126_v59  ;;  %v443_v63 = vand.u32 2147483647, %v379_v24  ;;  %v444_v14 = vand.u32 2147483647, %v380_v9  ;;  %v529_v29 = vsub.f32 1.0, %v465_v52 }
  0x92   :  { %3058 = vst [vmem:[#allocation32_spill] sm:$0xff] %v2128_v60  ;;  %v509_v15 = vsub.f32 1.0, %v445_v56  ;;  %v530_v4 = vsub.f32 1.0, %v466_v27  ;;  %v1746_v51 = vld [vmem:[%s2954_s3 + $0x3] ss:$4 sm:$0x3] }
  0x93   :  { %3059 = vst [vmem:[#allocation33_spill] sm:$0xff] %v2132_v38  ;;  %v507_v23 = vsub.f32 1.0, %v443_v63  ;;  %v1743_v52 = vclamps-f32 %v347_v36, 1.0  ;;  %v2172_v56 = vmax.f32 %v529_v29, 0.0  ;;  %v1033_v44 = vadd.f32 %v1746_v51, %v1740_v28 }
  0x94   :  { %3060 = vst [vmem:[#allocation34_spill] sm:$0xff] %v2134_v7  ;;  %294 = vperm.xlu2 %1755, %v1910_v19   ;;  %230 = vperm.xlu1 %1754, %v1814_v0   ;;  %v2144_v57 = vpop.permute.xlu2 %170  ;;  %v510_v19 = vsub.f32 1.0, %v446_v62  ;;  %v508_v0 = vsub.f32 1.0, %v444_v14  ;;  %v2174_v31 = vmax.f32 %v530_v4, 0.0  ;;  %v2176_v54 = vmax.f32 %v509_v15, 0.0 }
  0x95   :  { %3061 = vst [vmem:[#allocation35_spill] sm:$0xff] %v2136_v48  ;;  %226 = vperm.xlu0 %1756, %v1837_v5   ;;  %v2153_v49 = vpop.permute.xlu1 %120  ;;  %v2155_v8 = vpop.permute.xlu0 %115  ;;  %v407_v14 = vsub.f32 %v2144_v57, %v1989_v45  ;;  %v408_v27 = vsub.f32 %v2144_v57, %v1991_v46  ;;  %v353_v22 = vadd.f32 1.0, %v1743_v52  ;;  %v2180_v34 = vmax.f32 %v507_v23, 0.0 }
  0x96   :  { %3062 = vst [vmem:[#allocation36_spill] sm:$0xff] %v2138_v42  ;;  %v387_v50 = vsub.f32 %v2153_v49, %v1989_v45  ;;  %v388_v24 = vsub.f32 %v2153_v49, %v1991_v46  ;;  %v385_v9 = vsub.f32 %v2155_v8, %v1989_v45  ;;  %v386_v5 = vsub.f32 %v2155_v8, %v1991_v46 }
  0x97   :  { %3063 = vst [vmem:[#allocation37_spill] sm:$0xff] %v2140_v26  ;;  %v471_v60 = vand.u32 2147483647, %v407_v14  ;;  %v2178_v18 = vmax.f32 %v510_v19, 0.0  ;;  %v472_v29 = vand.u32 2147483647, %v408_v27  ;;  %v1073_v15 = vsub.f32 %v2153_v49, %v2023_v30 }
  0x98   :  { %3064 = vst [vmem:[#allocation38_spill] sm:$0xff] %v2144_v57  ;;  %v451_v62 = vand.u32 2147483647, %v387_v50  ;;  %v452_v63 = vand.u32 2147483647, %v388_v24  ;;  %v1747_v57 = vclamps-f32 %v1033_v44, 1.0 }
  0x99   :  { %3065 = vst [vmem:[#allocation39_spill] sm:$0xff] %v2155_v8  ;;  %v449_v33 = vand.u32 2147483647, %v385_v9  ;;  %v450_v47 = vand.u32 2147483647, %v386_v5  ;;  %v354_v50 = vmul.f32 7.5, %v353_v22 }
  0x9a   :  { %3066 = vst [vmem:[#allocation40_spill] sm:$0xff] %v2172_v56  ;;  %v515_v11 = vsub.f32 1.0, %v451_v62  ;;  %v516_v55 = vsub.f32 1.0, %v452_v63  ;;  %v2186_v24 = vmax.f32 %v508_v0, 0.0  ;;  %v536_v51 = vsub.f32 1.0, %v472_v29 }
  0x9b   :  { %3067 = vst [vmem:[#allocation41_spill] sm:$0xff] %v2174_v31  ;;  %v513_v36 = vsub.f32 1.0, %v449_v33  ;;  %v514_v4 = vsub.f32 1.0, %v450_v47  ;;  %v1039_v52 = vadd.f32 1.0, %v1747_v57 }
  0x9c   :  { %222 = vperm.xlu2 %1755, %v1819_v1   ;;  %290 = vperm.xlu1 %1754, %v1915_v20   ;;  %v2184_v28 = vpop.permute.xlu2 %185  ;;  %v2193_v9 = vmax.f32 %v515_v11, 0.0  ;;  %v2195_v44 = vmax.f32 %v516_v55, 0.0  ;;  %v535_v20 = vsub.f32 1.0, %v471_v60  ;;  %v2207_v60 = vperm.slane %v354_v50, 0 }
  0x9d   :  { %3068 = vst [vmem:[#allocation42_spill] sm:$0xff] %v2184_v28  ;;  %286 = vperm.xlu0 %1756, %v1920_v21   ;;  %v2191_v19 = vpop.permute.xlu1 %135  ;;  %v131_v23 = vpop.permute.xlu0 %130  ;;  %v413_v1 = vsub.f32 %v2184_v28, %v1989_v45  ;;  %v2201_v0 = vmax.f32 %v513_v36, 0.0  ;;  %v414_v21 = vsub.f32 %v2184_v28, %v1991_v46  ;;  %v1040_v33 = vmul.f32 7.5, %v1039_v52 }
  0x9e   :  { %3069 = vst [vmem:[#allocation43_spill] sm:$0xff] %v2191_v19  ;;  %v391_v47 = vsub.f32 %v131_v23, %v1989_v45  ;;  %v392_v22 = vsub.f32 %v131_v23, %v1991_v46  ;;  %v1077_v11 = vsub.f32 %v131_v23, %v2023_v30  ;;  %v1078_v62 = vsub.f32 %v131_v23, %v2029_v35 }
  0x9f   :  { %v477_v5 = vand.u32 2147483647, %v413_v1  ;;  %v478_v27 = vand.u32 2147483647, %v414_v21  ;;  %v2209_v36 = vperm.slane %v354_v50, 1  ;;  %v2211_v1 = vmax.f32 %v514_v4, 0.0 }
  0xa0   :  { %v455_v55 = vand.u32 2147483647, %v391_v47  ;;  %v456_v14 = vand.u32 2147483647, %v392_v22  ;;  %v1141_v39 = vand.u32 2147483647, %v1077_v11 }
  0xa1   :  { %v541_v63 = vsub.f32 1.0, %v477_v5  ;;  %v1142_v28 = vand.u32 2147483647, %v1078_v62  ;;  %v2213_v57 = vmax.f32 %v535_v20, 0.0  ;;  %v2215_v29 = vmax.f32 %v536_v51, 0.0 }
  0xa2   :  { %v519_v32 = vsub.f32 1.0, %v455_v55  ;;  %v520_v42 = vsub.f32 1.0, %v456_v14  ;;  %v1137_v47 = vand.u32 2147483647, %v1073_v15  ;;  %v542_v22 = vsub.f32 1.0, %v478_v27 }
  0xa3   :  { %v2219_v23 = vmax.f32 %v541_v63, 0.0  ;;  %v2221_v21 = vperm.slane %v1040_v33, 0  ;;  %v2223_v50 = vperm.slane %v1040_v33, 1  ;;  %v1206_v51 = vsub.f32 1.0, %v1142_v28 }
  0xa4   :  { %282 = vperm.xlu2 %1755, %v1895_v16   ;;  %218 = vperm.xlu1 %1754, %v1842_v6   ;;  %v2230_v5 = vmax.f32 %v519_v32, 0.0  ;;  %v2232_v15 = vmax.f32 %v520_v42, 0.0  ;;  %v1205_v16 = vsub.f32 1.0, %v1141_v39  ;;  %v1201_v42 = vsub.f32 1.0, %v1137_v47 }
  0xa5   :  { %214 = vperm.xlu0 %1756, %v1824_v2   ;;  %v2226_v4 = vpop.permute.xlu1 %150  ;;  %v2228_v20 = vpop.permute.xlu0 %145  ;;  %v1074_v28 = vsub.f32 %v2153_v49, %v2029_v35  ;;  %v2250_v59 = vmax.f32 %v542_v22, 0.0  ;;  %v2254_v26 = vmax.f32 %v1206_v51, 0.0  ;;  %v393_v47 = vsub.f32 %v2191_v19, %v1989_v45 }
  0xa6   :  { %3070 = vst [vmem:[#allocation44_spill] sm:$0xff] %v2226_v4  ;;  %v2234_v6 = vpop.permute.xlu2 %338  ;;  %v399_v52 = vsub.f32 %v2226_v4, %v1989_v45  ;;  %v400_v11 = vsub.f32 %v2226_v4, %v1991_v46  ;;  %v397_v2 = vsub.f32 %v2228_v20, %v1989_v45  ;;  %v398_v55 = vsub.f32 %v2228_v20, %v1991_v46 }
  0xa7   :  { %3071 = vst [vmem:[#allocation45_spill] sm:$0xff] %v2228_v20  ;;  %v684_v32 = vsub.f32 %v2234_v6, %v2207_v60  ;;  %v685_v39 = vsub.f32 %v2234_v6, %v2209_v36  ;;  %v2252_v40 = vmax.f32 %v1205_v16, 0.0  ;;  %v1138_v48 = vand.u32 2147483647, %v1074_v28 }
  0xa8   :  { %3072 = vst [vmem:[#allocation46_spill] sm:$0xff] %v2234_v6  ;;  %v463_v14 = vand.u32 2147483647, %v399_v52  ;;  %v464_v27 = vand.u32 2147483647, %v400_v11  ;;  %v1071_v49 = vsub.f32 %v2155_v8, %v2023_v30  ;;  %v2261_v22 = vmax.f32 %v1201_v42, 0.0 }
  0xa9   :  { %v461_v62 = vand.u32 2147483647, %v397_v2  ;;  %v748_v63 = vand.u32 2147483647, %v684_v32  ;;  %v749_v33 = vand.u32 2147483647, %v685_v39 }
  0xaa   :  { %v462_v4 = vand.u32 2147483647, %v398_v55  ;;  %v527_v41 = vsub.f32 1.0, %v463_v14  ;;  %v528_v20 = vsub.f32 1.0, %v464_v27  ;;  %3073 = vst [vmem:[#allocation47_spill] sm:$0xff] %v2261_v22 }
  0xab   :  { %v812_v52 = vsub.f32 1.0, %v748_v63  ;;  %v813_v11 = vsub.f32 1.0, %v749_v33  ;;  %v525_v2 = vsub.f32 1.0, %v461_v62  ;;  %v457_v28 = vand.u32 2147483647, %v393_v47 }
  0xac   :  { %278 = vperm.xlu1 %1754, %v1900_v17   ;;  %v2267_v51 = vmax.f32 %v527_v41, 0.0  ;;  %v2269_v32 = vmax.f32 %v528_v20, 0.0  ;;  %v526_v39 = vsub.f32 1.0, %v462_v4  ;;  %v1202_v20 = vsub.f32 1.0, %v1138_v48 }
  0xad   :  { %v2263_v55 = vpop.permute.xlu1 %165  ;;  %v2265_v16 = vpop.permute.xlu0 %160  ;;  %v521_v63 = vsub.f32 1.0, %v457_v28  ;;  %v2287_v6 = vmax.f32 %v812_v52, 0.0  ;;  %v2289_v7 = vmax.f32 %v525_v2, 0.0  ;;  %v2291_v38 = vmax.f32 %v813_v11, 0.0 }
  0xae   :  { %3074 = vst [vmem:[#allocation48_spill] sm:$0xff] %v2263_v55  ;;  %v2271_v14 = vpop.permute.xlu2 %334  ;;  %v405_v17 = vsub.f32 %v2263_v55, %v1989_v45  ;;  %v406_v27 = vsub.f32 %v2263_v55, %v1991_v46  ;;  %v403_v42 = vsub.f32 %v2265_v16, %v1989_v45  ;;  %v404_v62 = vsub.f32 %v2265_v16, %v1991_v46 }
  0xaf   :  { %3075 = vst [vmem:[#allocation49_spill] sm:$0xff] %v2265_v16  ;;  %v682_v41 = vsub.f32 %v2271_v14, %v2207_v60  ;;  %v683_v4 = vsub.f32 %v2271_v14, %v2209_v36  ;;  %v394_v55 = vsub.f32 %v2191_v19, %v1991_v46  ;;  %v2295_v48 = vmax.f32 %v1202_v20, 0.0 }
  0xb0   :  { %3076 = vst [vmem:[#allocation50_spill] sm:$0xff] %v2267_v51  ;;  %v469_v33 = vand.u32 2147483647, %v405_v17  ;;  %v470_v47 = vand.u32 2147483647, %v406_v27 }
  0xb1   :  { %3077 = vst [vmem:[#allocation51_spill] sm:$0xff] %v2269_v32  ;;  %v467_v32 = vand.u32 2147483647, %v403_v42  ;;  %v746_v51 = vand.u32 2147483647, %v682_v41  ;;  %v2297_v42 = vmax.f32 %v521_v63, 0.0 }
  0xb2   :  { %3078 = vst [vmem:[#allocation52_spill] sm:$0xff] %v2271_v14  ;;  %v747_v8 = vand.u32 2147483647, %v683_v4  ;;  %v468_v35 = vand.u32 2147483647, %v404_v62  ;;  %v533_v16 = vsub.f32 1.0, %v469_v33 }
  0xb3   :  { %v534_v30 = vsub.f32 1.0, %v470_v47  ;;  %3079 = vst [vmem:[#allocation53_spill] sm:$0xff] %v2289_v7  ;;  %v2293_v14 = vmax.f32 %v526_v39, 0.0  ;;  %v458_v28 = vand.u32 2147483647, %v394_v55  ;;  %v810_v17 = vsub.f32 1.0, %v746_v51 }
  0xb4   :  { %3081 = vst [vmem:[#allocation55_spill] sm:$0xff] %v2295_v48  ;;  %v531_v27 = vsub.f32 1.0, %v467_v32  ;;  %v1135_v41 = vand.u32 2147483647, %v1071_v49  ;;  %v811_v62 = vsub.f32 1.0, %v747_v8  ;;  %v2303_v33 = vmax.f32 %v533_v16, 0.0 }
  0xb5   :  { %3080 = vst [vmem:[#allocation54_spill] sm:$0xff] %v2293_v14  ;;  %v2299_v4 = vpop.permute.xlu1 %180  ;;  %v2301_v52 = vpop.permute.xlu0 %175  ;;  %v2305_v2 = vmax.f32 %v534_v30, 0.0  ;;  %v532_v11 = vsub.f32 1.0, %v468_v35  ;;  %v522_v35 = vsub.f32 1.0, %v458_v28 }
  0xb6   :  { %3082 = vst [vmem:[#allocation56_spill] sm:$0xff] %v2297_v42  ;;  %v2307_v39 = vpop.permute.xlu2 %330  ;;  %v411_v55 = vsub.f32 %v2299_v4, %v1989_v45  ;;  %v412_v51 = vsub.f32 %v2299_v4, %v1991_v46  ;;  %v409_v49 = vsub.f32 %v2301_v52, %v1989_v45  ;;  %v410_v32 = vsub.f32 %v2301_v52, %v1991_v46 }
  0xb7   :  { %3083 = vst [vmem:[#allocation57_spill] sm:$0xff] %v2299_v4  ;;  %v680_v8 = vsub.f32 %v2307_v39, %v2207_v60  ;;  %v681_v30 = vsub.f32 %v2307_v39, %v2209_v36  ;;  %v1199_v16 = vsub.f32 1.0, %v1135_v41  ;;  %v2325_v56 = vmax.f32 %v811_v62, 0.0 }
  0xb8   :  { %3084 = vst [vmem:[#allocation58_spill] sm:$0xff] %v2301_v52  ;;  %v475_v20 = vand.u32 2147483647, %v411_v55  ;;  %v476_v63 = vand.u32 2147483647, %v412_v51  ;;  %v2323_v52 = vmax.f32 %v810_v17, 0.0 }
  0xb9   :  { %3085 = vst [vmem:[#allocation59_spill] sm:$0xff] %v2303_v33  ;;  %v473_v47 = vand.u32 2147483647, %v409_v49  ;;  %v744_v19 = vand.u32 2147483647, %v680_v8  ;;  %v2321_v33 = vmax.f32 %v531_v27, 0.0 }
  0xba   :  { %3086 = vst [vmem:[#allocation60_spill] sm:$0xff] %v2305_v2  ;;  %v745_v42 = vand.u32 2147483647, %v681_v30  ;;  %v474_v4 = vand.u32 2147483647, %v410_v32  ;;  %v539_v14 = vsub.f32 1.0, %v475_v20 }
  0xbb   :  { %3087 = vst [vmem:[#allocation61_spill] sm:$0xff] %v2307_v39  ;;  %v540_v7 = vsub.f32 1.0, %v476_v63  ;;  %v537_v2 = vsub.f32 1.0, %v473_v47  ;;  %v808_v48 = vsub.f32 1.0, %v744_v19  ;;  %v2327_v28 = vmax.f32 %v532_v11, 0.0 }
  0xbc   :  { %3088 = vst [vmem:[#allocation62_spill] sm:$0xff] %v2321_v33  ;;  %v809_v22 = vsub.f32 1.0, %v745_v42  ;;  %v538_v31 = vsub.f32 1.0, %v474_v4  ;;  %v2329_v41 = vmax.f32 %v522_v35, 0.0  ;;  %v2331_v55 = vmax.f32 %v1199_v16, 0.0 }
  0xbd   :  { %3089 = vst [vmem:[#allocation63_spill] sm:$0xff] %v2327_v28  ;;  %v2333_v51 = vpop.permute.xlu0 %210  ;;  %v2335_v49 = vmax.f32 %v808_v48, 0.0  ;;  %v2337_v32 = vmax.f32 %v539_v14, 0.0  ;;  %v2339_v27 = vmax.f32 %v540_v7, 0.0  ;;  %v2341_v17 = vmax.f32 %v537_v2, 0.0 }
  0xbe   :  { %3090 = vst [vmem:[#allocation64_spill] sm:$0xff] %v2329_v41  ;;  %v2343_v19 = vpop.permute.xlu2 %326  ;;  %v275_v42 = vpop.permute.xlu1 %274  ;;  %v423_v4 = vsub.f32 %v2333_v51, %v1989_v45  ;;  %v424_v62 = vsub.f32 %v2333_v51, %v1991_v46  ;;  %v2349_v11 = vmax.f32 %v809_v22, 0.0  ;;  %v2351_v8 = vmax.f32 %v538_v31, 0.0 }
  0xbf   :  { %3091 = vst [vmem:[#allocation65_spill] sm:$0xff] %v2331_v55  ;;  %v652_v14 = vsub.f32 %v275_v42, %v2207_v60  ;;  %v653_v7 = vsub.f32 %v275_v42, %v2209_v36  ;;  %v678_v48 = vsub.f32 %v2343_v19, %v2207_v60  ;;  %v679_v2 = vsub.f32 %v2343_v19, %v2209_v36 }
  0xc0   :  { %3092 = vst [vmem:[#allocation66_spill] sm:$0xff] %v2333_v51  ;;  %v487_v30 = vand.u32 2147483647, %v423_v4  ;;  %v488_v35 = vand.u32 2147483647, %v424_v62  ;;  %v1338_v16 = vsub.f32 %v275_v42, %v2221_v21  ;;  %v1339_v20 = vsub.f32 %v275_v42, %v2223_v50 }
  0xc1   :  { %3093 = vst [vmem:[#allocation67_spill] sm:$0xff] %v2337_v32  ;;  %v716_v22 = vand.u32 2147483647, %v652_v14  ;;  %v717_v63 = vand.u32 2147483647, %v653_v7 }
  0xc2   :  { %3094 = vst [vmem:[#allocation68_spill] sm:$0xff] %v2339_v27  ;;  %v742_v31 = vand.u32 2147483647, %v678_v48  ;;  %v551_v47 = vsub.f32 1.0, %v487_v30  ;;  %v552_v39 = vsub.f32 1.0, %v488_v35 }
  0xc3   :  { %3095 = vst [vmem:[#allocation69_spill] sm:$0xff] %v2341_v17  ;;  %v743_v41 = vand.u32 2147483647, %v679_v2  ;;  %v1402_v55 = vand.u32 2147483647, %v1338_v16  ;;  %v780_v51 = vsub.f32 1.0, %v716_v22 }
  0xc4   :  { %3096 = vst [vmem:[#allocation70_spill] sm:$0xff] %v2343_v19  ;;  %v781_v28 = vsub.f32 1.0, %v717_v63  ;;  %v806_v33 = vsub.f32 1.0, %v742_v31  ;;  %v615_v17 = vmax.f32 %v551_v47, 0.0  ;;  %v616_v27 = vmax.f32 %v552_v39, 0.0 }
  0xc5   :  { %3097 = vst [vmem:[#allocation71_spill] sm:$0xff] %v2351_v8  ;;  %v1403_v8 = vand.u32 2147483647, %v1339_v20  ;;  %v807_v19 = vsub.f32 1.0, %v743_v41  ;;  %v1466_v4 = vsub.f32 1.0, %v1402_v55  ;;  %v2361_v62 = vpop.permute.xlu0 %205  ;;  %v844_v32 = vmax.f32 %v780_v51, 0.0 }
  0xc6   :  { %v845_v53 = vmax.f32 %v781_v28, 0.0  ;;  %v2363_v42 = vmax.f32 %v806_v33, 0.0  ;;  %v2365_v7 = vpop.permute.xlu2 %322  ;;  %v2367_v48 = vpop.permute.xlu1 %270  ;;  %v940_v2 = vmul.f32 %v2287_v6, %v615_v17  ;;  %v941_v30 = vmul.f32 %v2291_v38, %v616_v27 }
  0xc7   :  { %v1467_v14 = vsub.f32 1.0, %v1403_v8  ;;  %v421_v39 = vsub.f32 %v2361_v62, %v1989_v45  ;;  %v422_v41 = vsub.f32 %v2361_v62, %v1991_v46  ;;  %v908_v55 = vmul.f32 %v844_v32, %v2230_v5 }
  0xc8   :  { %v909_v33 = vmul.f32 %v845_v53, %v2232_v15  ;;  %v650_v28 = vsub.f32 %v2367_v48, %v2207_v60  ;;  %v651_v51 = vsub.f32 %v2367_v48, %v2209_v36  ;;  %964 = vmatpush.msra.mxu1 %v940_v2  ;;  %1004 = vmatpush.msra.mxu3 %v941_v30  ;;  %v2381_v27 = vmax.f32 %v807_v19, 0.0 }
  0xc9   :  { %v485_v6 = vand.u32 2147483647, %v421_v39  ;;  %v486_v38 = vand.u32 2147483647, %v422_v41  ;;  %v676_v17 = vsub.f32 %v2365_v7, %v2207_v60  ;;  %944 = vmatpush.msra.mxu0 %v908_v55  ;;  %v677_v53 = vsub.f32 %v2365_v7, %v2209_v36 }
  0xca   :  { %984 = vmatpush.msra.mxu2 %v909_v33  ;;  %v714_v5 = vand.u32 2147483647, %v650_v28  ;;  %v715_v32 = vand.u32 2147483647, %v651_v51  ;;  %v1530_v15 = vmax.f32 %v1466_v4, 0.0  ;;  %v1531_v20 = vmax.f32 %v1467_v14, 0.0 }
  0xcb   :  { %v549_v8 = vsub.f32 1.0, %v485_v6  ;;  %v550_v35 = vsub.f32 1.0, %v486_v38  ;;  %v740_v16 = vand.u32 2147483647, %v676_v17  ;;  %v741_v31 = vand.u32 2147483647, %v677_v53 }
  0xcc   :  { %v778_v22 = vsub.f32 1.0, %v714_v5  ;;  %v779_v63 = vsub.f32 1.0, %v715_v32  ;;  %v2388_v19 = vmul.f32 %v1530_v15, %v2252_v40  ;;  %v2391_v39 = vmul.f32 %v1531_v20, %v2254_v26 }
  0xcd   :  { %v613_v47 = vmax.f32 %v549_v8, 0.0  ;;  %v614_v2 = vmax.f32 %v550_v35, 0.0  ;;  %v804_v30 = vsub.f32 1.0, %v740_v16  ;;  %v2393_v41 = vpop.permute.xlu0 %200  ;;  %v805_v33 = vsub.f32 1.0, %v741_v31 }
  0xce   :  { %v842_v55 = vmax.f32 %v778_v22, 0.0  ;;  %v843_v4 = vmax.f32 %v779_v63, 0.0  ;;  %v1336_v14 = vsub.f32 %v2367_v48, %v2221_v21  ;;  %v2397_v28 = vpop.permute.xlu2 %250  ;;  %v2399_v51 = vpop.permute.xlu1 %266  ;;  %v419_v26 = vsub.f32 %v2393_v41, %v1989_v45 }
  0xcf   :  { %v938_v40 = vmul.f32 %v2323_v52, %v613_v47  ;;  %v939_v6 = vmul.f32 %v2325_v56, %v614_v2  ;;  %v420_v38 = vsub.f32 %v2393_v41, %v1991_v46  ;;  %v648_v32 = vsub.f32 %v2399_v51, %v2207_v60 }
  0xd0   :  { %v906_v17 = vmul.f32 %v842_v55, %v2093_v58  ;;  %v907_v5 = vmul.f32 %v843_v4, %v2095_v43  ;;  %v649_v53 = vsub.f32 %v2399_v51, %v2209_v36  ;;  %v483_v52 = vand.u32 2147483647, %v419_v26 }
  0xd1   :  { %965 = vmatpush.msra.mxu1 %v938_v40  ;;  %1005 = vmatpush.msra.mxu3 %v939_v6  ;;  %v484_v56 = vand.u32 2147483647, %v420_v38  ;;  %v2413_v15 = vmax.f32 %v804_v30, 0.0  ;;  %v2415_v8 = vmax.f32 %v805_v33, 0.0  ;;  %v712_v35 = vand.u32 2147483647, %v648_v32 }
  0xd2   :  { %945 = vmatpush.msra.mxu0 %v906_v17  ;;  %985 = vmatpush.msra.mxu2 %v907_v5  ;;  %v713_v58 = vand.u32 2147483647, %v649_v53  ;;  %v640_v43 = vsub.f32 %v2397_v28, %v2207_v60  ;;  %v641_v16 = vsub.f32 %v2397_v28, %v2209_v36  ;;  %v547_v20 = vsub.f32 1.0, %v483_v52 }
  0xd3   :  { %v548_v22 = vsub.f32 1.0, %v484_v56  ;;  %v1400_v63 = vand.u32 2147483647, %v1336_v14  ;;  %v1337_v31 = vsub.f32 %v2367_v48, %v2223_v50  ;;  %v776_v47 = vsub.f32 1.0, %v712_v35 }
  0xd4   :  { %v777_v2 = vsub.f32 1.0, %v713_v58  ;;  %v704_v30 = vand.u32 2147483647, %v640_v43  ;;  %v705_v55 = vand.u32 2147483647, %v641_v16  ;;  %v611_v4 = vmax.f32 %v547_v20, 0.0 }
  0xd5   :  { %v612_v33 = vmax.f32 %v548_v22, 0.0  ;;  %v1464_v40 = vsub.f32 1.0, %v1400_v63  ;;  %v2423_v6 = vand.u32 2147483647, %v1337_v31  ;;  %v2425_v26 = vpop.permute.xlu0 %195  ;;  %v840_v38 = vmax.f32 %v776_v47, 0.0 }
  0xd6   :  { %v841_v17 = vmax.f32 %v777_v2, 0.0  ;;  %v768_v5 = vsub.f32 1.0, %v704_v30  ;;  %v769_v32 = vsub.f32 1.0, %v705_v55  ;;  %v2427_v53 = vpop.permute.xlu2 %246  ;;  %v2429_v14 = vpop.permute.xlu1 %262  ;;  %v936_v48 = vmul.f32 %v2335_v49, %v611_v4 }
  0xd7   :  { %v937_v52 = vmul.f32 %v2349_v11, %v612_v33  ;;  %v417_v56 = vsub.f32 %v2425_v26, %v1989_v45  ;;  %v418_v35 = vsub.f32 %v2425_v26, %v1991_v46  ;;  %v904_v58 = vmul.f32 %v840_v38, %v2193_v9 }
  0xd8   :  { %v905_v43 = vmul.f32 %v841_v17, %v2195_v44  ;;  %v646_v16 = vsub.f32 %v2429_v14, %v2207_v60  ;;  %v647_v20 = vsub.f32 %v2429_v14, %v2209_v36  ;;  %966 = vmatpush.msra.mxu1 %v936_v48  ;;  %v832_v22 = vmax.f32 %v768_v5, 0.0 }
  0xd9   :  { %1006 = vmatpush.msra.mxu3 %v937_v52  ;;  %v481_v49 = vand.u32 2147483647, %v417_v56  ;;  %v482_v11 = vand.u32 2147483647, %v418_v35  ;;  %v833_v63 = vmax.f32 %v769_v32, 0.0  ;;  %946 = vmatpush.msra.mxu0 %v904_v58  ;;  %v638_v9 = vsub.f32 %v2427_v53, %v2207_v60 }
  0xda   :  { %986 = vmatpush.msra.mxu2 %v905_v43  ;;  %v710_v31 = vand.u32 2147483647, %v646_v16  ;;  %v711_v47 = vand.u32 2147483647, %v647_v20  ;;  %v639_v44 = vsub.f32 %v2427_v53, %v2209_v36  ;;  %v2448_v55 = vmul.f32 %v832_v22, %v2180_v34 }
  0xdb   :  { %v545_v2 = vsub.f32 1.0, %v481_v49  ;;  %v546_v30 = vsub.f32 1.0, %v482_v11  ;;  %v2451_v4 = vmul.f32 %v833_v63, %v2186_v24  ;;  %v702_v17 = vand.u32 2147483647, %v638_v9 }
  0xdc   :  { %v774_v33 = vsub.f32 1.0, %v710_v31  ;;  %v775_v38 = vsub.f32 1.0, %v711_v47  ;;  %v703_v5 = vand.u32 2147483647, %v639_v44  ;;  %v1528_v52 = vmax.f32 %v1464_v40, 0.0 }
  0xdd   :  { %v609_v32 = vmax.f32 %v545_v2, 0.0  ;;  %v610_v48 = vmax.f32 %v546_v30, 0.0  ;;  %v1465_v56 = vsub.f32 1.0, %v2423_v6  ;;  %v2454_v35 = vpop.permute.xlu0 %190  ;;  %v766_v16 = vsub.f32 1.0, %v702_v17 }
  0xde   :  { %v838_v58 = vmax.f32 %v774_v33, 0.0  ;;  %v839_v43 = vmax.f32 %v775_v38, 0.0  ;;  %v767_v20 = vsub.f32 1.0, %v703_v5  ;;  %v2456_v34 = vpop.permute.xlu2 %306  ;;  %v2458_v49 = vpop.permute.xlu1 %258  ;;  %v415_v22 = vsub.f32 %v2454_v35, %v1989_v45 }
  0xdf   :  { %v934_v24 = vmul.f32 %v2363_v42, %v609_v32  ;;  %v935_v11 = vmul.f32 %v2381_v27, %v610_v48  ;;  %v416_v40 = vsub.f32 %v2454_v35, %v1991_v46  ;;  %v644_v31 = vsub.f32 %v2458_v49, %v2207_v60 }
  0xe0   :  { %v902_v6 = vmul.f32 %v838_v58, %v2201_v0  ;;  %v903_v63 = vmul.f32 %v839_v43, %v2211_v1  ;;  %v645_v47 = vsub.f32 %v2458_v49, %v2209_v36  ;;  %v479_v42 = vand.u32 2147483647, %v415_v22 }
  0xe1   :  { %967 = vmatpush.msra.mxu1 %v934_v24  ;;  %1007 = vmatpush.msra.mxu3 %v935_v11  ;;  %v480_v27 = vand.u32 2147483647, %v416_v40  ;;  %v830_v9 = vmax.f32 %v766_v16, 0.0  ;;  %v831_v44 = vmax.f32 %v767_v20, 0.0  ;;  %v708_v45 = vand.u32 2147483647, %v644_v31 }
  0xe2   :  { %947 = vmatpush.msra.mxu0 %v902_v6  ;;  %987 = vmatpush.msra.mxu2 %v903_v63  ;;  %v709_v46 = vand.u32 2147483647, %v645_v47  ;;  %v668_v0 = vsub.f32 %v2456_v34, %v2207_v60  ;;  %v669_v1 = vsub.f32 %v2456_v34, %v2209_v36  ;;  %v543_v2 = vsub.f32 1.0, %v479_v42 }
  0xe3   :  { %v544_v30 = vsub.f32 1.0, %v480_v27  ;;  %v2477_v33 = vmul.f32 %v830_v9, %v2053_v3  ;;  %v2480_v38 = vmul.f32 %v831_v44, %v2055_v10  ;;  %v772_v17 = vsub.f32 1.0, %v708_v45 }
  0xe4   :  { %v773_v5 = vsub.f32 1.0, %v709_v46  ;;  %v732_v32 = vand.u32 2147483647, %v668_v0  ;;  %v733_v48 = vand.u32 2147483647, %v669_v1  ;;  %v607_v58 = vmax.f32 %v543_v2, 0.0 }
  0xe5   :  { %v608_v43 = vmax.f32 %v544_v30, 0.0  ;;  %v2483_v16 = vmul.f32 %v1528_v52, %v2101_v25  ;;  %v1529_v20 = vmax.f32 %v1465_v56, 0.0  ;;  %v836_v24 = vmax.f32 %v772_v17, 0.0 }
  0xe6   :  { %v837_v11 = vmax.f32 %v773_v5, 0.0  ;;  %v796_v22 = vsub.f32 1.0, %v732_v32  ;;  %v797_v40 = vsub.f32 1.0, %v733_v48  ;;  %v2485_v6 = vpop.permute.xlu2 %234  ;;  %v2487_v3 = vpop.permute.xlu1 %318  ;;  %v932_v10 = vmul.f32 %v2413_v15, %v607_v58 }
  0xe7   :  { %v933_v63 = vmul.f32 %v2415_v8, %v608_v43  ;;  %v2492_v31 = vmul.f32 %v1529_v20, %v2130_v61  ;;  %v1334_v25 = vsub.f32 %v2399_v51, %v2221_v21  ;;  %v2496_v52 = vpop.permute.xlu0 %254  ;;  %v900_v56 = vmul.f32 %v836_v24, %v2059_v12 }
  0xe8   :  { %v901_v47 = vmul.f32 %v837_v11, %v2061_v13  ;;  %v674_v42 = vsub.f32 %v2487_v3, %v2207_v60  ;;  %v675_v15 = vsub.f32 %v2487_v3, %v2209_v36  ;;  %968 = vmatpush.msra.mxu1 %v932_v10  ;;  %v642_v61 = vsub.f32 %v2496_v52, %v2207_v60 }
  0xe9   :  { %1008 = vmatpush.msra.mxu3 %v933_v63  ;;  %v643_v8 = vsub.f32 %v2496_v52, %v2209_v36  ;;  %v860_v27 = vmax.f32 %v796_v22, 0.0  ;;  %v861_v9 = vmax.f32 %v797_v40, 0.0  ;;  %948 = vmatpush.msra.mxu0 %v900_v56  ;;  %v632_v44 = vsub.f32 %v2485_v6, %v2207_v60 }
  0xea   :  { %988 = vmatpush.msra.mxu2 %v901_v47  ;;  %v738_v12 = vand.u32 2147483647, %v674_v42  ;;  %v739_v13 = vand.u32 2147483647, %v675_v15  ;;  %v633_v45 = vsub.f32 %v2485_v6, %v2209_v36  ;;  %v706_v46 = vand.u32 2147483647, %v642_v61 }
  0xeb   :  { %v707_v0 = vand.u32 2147483647, %v643_v8  ;;  %v2513_v1 = vmul.f32 %v860_v27, %v2213_v57  ;;  %v2516_v2 = vmul.f32 %v861_v9, %v2215_v29  ;;  %v696_v5 = vand.u32 2147483647, %v632_v44 }
  0xec   :  { %v802_v30 = vsub.f32 1.0, %v738_v12  ;;  %v803_v17 = vsub.f32 1.0, %v739_v13  ;;  %v697_v32 = vand.u32 2147483647, %v633_v45  ;;  %v770_v48 = vsub.f32 1.0, %v706_v46 }
  0xed   :  { %v771_v58 = vsub.f32 1.0, %v707_v0  ;;  %v1398_v43 = vand.u32 2147483647, %v1334_v25  ;;  %v1335_v20 = vsub.f32 %v2399_v51, %v2223_v50  ;;  %v760_v22 = vsub.f32 1.0, %v696_v5  ;;  %v3099_v5 = vld [vmem:[#allocation17_spill] sm:$0xff] }
  0xee   :  { %v866_v24 = vmax.f32 %v802_v30, 0.0  ;;  %v867_v11 = vmax.f32 %v803_v17, 0.0  ;;  %v761_v40 = vsub.f32 1.0, %v697_v32  ;;  %v2520_v10 = vpop.permute.xlu2 %294  ;;  %v2522_v57 = vpop.permute.xlu1 %314  ;;  %v834_v29 = vmax.f32 %v770_v48, 0.0 }
  0xef   :  { %3098 = vst [vmem:[#allocation72_spill] sm:$0xff] %v2520_v10  ;;  %v835_v63 = vmax.f32 %v771_v58, 0.0  ;;  %v1462_v56 = vsub.f32 1.0, %v1398_v43  ;;  %v2524_v47 = vand.u32 2147483647, %v1335_v20  ;;  %v2526_v42 = vpop.permute.xlu0 %310  ;;  %v672_v51 = vsub.f32 %v2522_v57, %v2207_v60 }
  0xf0   :  { %v930_v25 = vmul.f32 %v866_v24, %v2219_v23  ;;  %v931_v15 = vmul.f32 %v867_v11, %v2250_v59  ;;  %v673_v61 = vsub.f32 %v2522_v57, %v2209_v36  ;;  %v898_v8 = vmul.f32 %v834_v29, %v2176_v54 }
  0xf1   :  { %v899_v27 = vmul.f32 %v835_v63, %v2178_v18  ;;  %v670_v9 = vsub.f32 %v2526_v42, %v2207_v60  ;;  %v671_v12 = vsub.f32 %v2526_v42, %v2209_v36  ;;  %v736_v23 = vand.u32 2147483647, %v672_v51  ;;  %v3101_v51 = vld [vmem:[#allocation67_spill] sm:$0xff] }
  0xf2   :  { %969 = vmatpush.msra.mxu1 %v930_v25  ;;  %1009 = vmatpush.msra.mxu3 %v931_v15  ;;  %v737_v59 = vand.u32 2147483647, %v673_v61  ;;  %v824_v13 = vmax.f32 %v760_v22, 0.0  ;;  %v825_v44 = vmax.f32 %v761_v40, 0.0  ;;  %v662_v54 = vsub.f32 %v2520_v10, %v2207_v60 }
  0xf3   :  { %949 = vmatpush.msra.mxu0 %v898_v8  ;;  %989 = vmatpush.msra.mxu2 %v899_v27  ;;  %v734_v45 = vand.u32 2147483647, %v670_v9  ;;  %v735_v46 = vand.u32 2147483647, %v671_v12  ;;  %v663_v18 = vsub.f32 %v2520_v10, %v2209_v36  ;;  %v800_v0 = vsub.f32 1.0, %v736_v23  ;;  %v3102_v8 = vld [vmem:[#allocation68_spill] sm:$0xff] }
  0xf4   :  { %v801_v30 = vsub.f32 1.0, %v737_v59  ;;  %v2545_v17 = vmul.f32 %v824_v13, %v2033_v37  ;;  %v2548_v32 = vmul.f32 %v825_v44, %v3099_v5  ;;  %v726_v43 = vand.u32 2147483647, %v662_v54  ;;  %v3104_v9 = vld [vmem:[#allocation71_spill] sm:$0xff] }
  0xf5   :  { %950 = vmatpush.msra.mxu0 %v2448_v55  ;;  %990 = vmatpush.msra.mxu2 %v2451_v4  ;;  %v798_v48 = vsub.f32 1.0, %v734_v45  ;;  %v799_v58 = vsub.f32 1.0, %v735_v46  ;;  %v727_v20 = vand.u32 2147483647, %v663_v18  ;;  %v864_v24 = vmax.f32 %v800_v0, 0.0 }
  0xf6   :  { %v865_v11 = vmax.f32 %v801_v30, 0.0  ;;  %v1526_v22 = vmax.f32 %v1462_v56, 0.0  ;;  %v1463_v40 = vsub.f32 1.0, %v2524_v47  ;;  %v2555_v37 = vpop.permute.xlu2 %222  ;;  %v2557_v29 = vpop.permute.xlu1 %242  ;;  %v790_v4 = vsub.f32 1.0, %v726_v43 }
  0xf7   :  { %951 = vmatpush.msra.mxu0 %v2477_v33  ;;  %991 = vmatpush.msra.mxu2 %v2480_v38  ;;  %3100 = vst [vmem:[#allocation17_spill] sm:$0xff] %v2555_v37  ;;  %v862_v55 = vmax.f32 %v798_v48, 0.0  ;;  %v863_v63 = vmax.f32 %v799_v58, 0.0  ;;  %v791_v25 = vsub.f32 1.0, %v727_v20  ;;  %v2559_v15 = vpop.permute.xlu0 %238  ;;  %v928_v61 = vmul.f32 %v864_v24, %v3101_v51  ;;  %v3103_v38 = vld [vmem:[#allocation69_spill] sm:$0xff]  ;;  %v3105_v58 = vld [vmem:[#allocation40_spill] sm:$0xff] }
  0xf8   :  { %v929_v56 = vmul.f32 %v865_v11, %v3102_v8  ;;  %v636_v47 = vsub.f32 %v2557_v29, %v2207_v60  ;;  %v637_v33 = vsub.f32 %v2557_v29, %v2209_v36  ;;  %v634_v23 = vsub.f32 %v2559_v15, %v2207_v60  ;;  %v3106_v20 = vld [vmem:[#allocation41_spill] sm:$0xff] }
  0xf9   :  { %v926_v27 = vmul.f32 %v862_v55, %v3103_v38  ;;  %v927_v12 = vmul.f32 %v863_v63, %v3104_v9  ;;  %v635_v59 = vsub.f32 %v2559_v15, %v2209_v36  ;;  %970 = vmatpush.msra.mxu1 %v928_v61  ;;  %v854_v45 = vmax.f32 %v790_v4, 0.0  ;;  %v3107_v61 = vld [vmem:[#allocation47_spill] sm:$0xff] }
  0xfa   :  { %1010 = vmatpush.msra.mxu3 %v929_v56  ;;  %v700_v13 = vand.u32 2147483647, %v636_v47  ;;  %v701_v44 = vand.u32 2147483647, %v637_v33  ;;  %v855_v46 = vmax.f32 %v791_v25, 0.0  ;;  %v626_v0 = vsub.f32 %v2555_v37, %v2207_v60 }
  0xfb   :  { %v698_v54 = vand.u32 2147483647, %v634_v23  ;;  %v699_v18 = vand.u32 2147483647, %v635_v59  ;;  %v627_v30 = vsub.f32 %v2555_v37, %v2209_v36  ;;  %971 = vmatpush.msra.mxu1 %v926_v27  ;;  %v2578_v43 = vmul.f32 %v854_v45, %v3105_v58 }
  0xfc   :  { %1011 = vmatpush.msra.mxu3 %v927_v12  ;;  %v764_v5 = vsub.f32 1.0, %v700_v13  ;;  %v765_v48 = vsub.f32 1.0, %v701_v44  ;;  %v2581_v24 = vmul.f32 %v855_v46, %v3106_v20  ;;  %v690_v63 = vand.u32 2147483647, %v626_v0  ;;  %v3112_v46 = vld [vmem:[#allocation35_spill] sm:$0xff] }
  0xfd   :  { %v762_v11 = vsub.f32 1.0, %v698_v54  ;;  %v763_v55 = vsub.f32 1.0, %v699_v18  ;;  %v691_v4 = vand.u32 2147483647, %v627_v30  ;;  %972 = vmatpush.msra.mxu1 %v2513_v1  ;;  %v2586_v8 = vmul.f32 %v1526_v22, %v3107_v61  ;;  %v3110_v22 = vld [vmem:[#allocation33_spill] sm:$0xff] }
  0xfe   :  { %1012 = vmatpush.msra.mxu3 %v2516_v2  ;;  %v828_v25 = vmax.f32 %v764_v5, 0.0  ;;  %v829_v51 = vmax.f32 %v765_v48, 0.0  ;;  %v1527_v56 = vmax.f32 %v1463_v40, 0.0  ;;  %v283_v47 = vpop.permute.xlu2 %282  ;;  %v2588_v33 = vpop.permute.xlu1 %302  ;;  %v754_v9 = vsub.f32 1.0, %v690_v63  ;;  %v3111_v40 = vld [vmem:[#allocation34_spill] sm:$0xff]  ;;  %v3113_v18 = vld [vmem:[#allocation37_spill] sm:$0xff] }
  0xff   :  { %3108 = vst [vmem:[#allocation67_spill] sm:$0xff] %v2588_v33  ;;  %v826_v38 = vmax.f32 %v762_v11, 0.0  ;;  %v827_v27 = vmax.f32 %v763_v55, 0.0  ;;  %v755_v12 = vsub.f32 1.0, %v691_v4  ;;  %v656_v23 = vsub.f32 %v283_v47, %v2207_v60  ;;  %v2594_v13 = vpop.permute.xlu0 %298 }
 0x100   :  { %v657_v59 = vsub.f32 %v283_v47, %v2209_v36  ;;  %v1342_v1 = vsub.f32 %v283_v47, %v2221_v21  ;;  %v1343_v2 = vsub.f32 %v283_v47, %v2223_v50  ;;  %3109 = vst [vmem:[#allocation68_spill] sm:$0xff] %v2594_v13  ;;  %v892_v44 = vmul.f32 %v828_v25, %v3110_v22 }
 0x101   :  { %v893_v45 = vmul.f32 %v829_v51, %v3111_v40  ;;  %v890_v54 = vmul.f32 %v826_v38, %v3112_v46  ;;  %v891_v0 = vmul.f32 %v827_v27, %v3113_v18  ;;  %v720_v30 = vand.u32 2147483647, %v656_v23  ;;  %v3116_v23 = vld [vmem:[#allocation55_spill] sm:$0xff] }
 0x102   :  { %v721_v5 = vand.u32 2147483647, %v657_v59  ;;  %v2600_v48 = vand.u32 2147483647, %v1342_v1  ;;  %v666_v58 = vsub.f32 %v2588_v33, %v2207_v60  ;;  %v2604_v20 = vand.u32 2147483647, %v1343_v2  ;;  %952 = vmatpush.msra.mxu0 %v892_v44 }
 0x103   :  { %992 = vmatpush.msra.mxu2 %v893_v45  ;;  %v667_v11 = vsub.f32 %v2588_v33, %v2209_v36  ;;  %v664_v55 = vsub.f32 %v2594_v13, %v2207_v60  ;;  %v665_v63 = vsub.f32 %v2594_v13, %v2209_v36  ;;  %v818_v25 = vmax.f32 %v754_v9, 0.0  ;;  %v3117_v2 = vld [vmem:[#allocation19_spill] sm:$0xff]  ;;  %v3118_v44 = vld [vmem:[#allocation20_spill] sm:$0xff] }
 0x104   :  { %3114 = vst [vmem:[#allocation69_spill] sm:$0xff] %v2600_v48  ;;  %v730_v4 = vand.u32 2147483647, %v666_v58  ;;  %v819_v51 = vmax.f32 %v755_v12, 0.0  ;;  %v784_v61 = vsub.f32 1.0, %v720_v30  ;;  %953 = vmatpush.msra.mxu0 %v890_v54  ;;  %v2613_v59 = vmul.f32 %v1527_v56, %v3116_v23  ;;  %v3122_v23 = vld [vmem:[#allocation62_spill] sm:$0xff] }
 0x105   :  { %3115 = vst [vmem:[#allocation71_spill] sm:$0xff] %v2604_v20  ;;  %993 = vmatpush.msra.mxu2 %v891_v0  ;;  %v731_v47 = vand.u32 2147483647, %v667_v11  ;;  %v728_v38 = vand.u32 2147483647, %v664_v55  ;;  %v2616_v22 = vmul.f32 %v818_v25, %v3117_v2  ;;  %v785_v18 = vsub.f32 1.0, %v721_v5 }
 0x106   :  { %v729_v27 = vand.u32 2147483647, %v665_v63  ;;  %v794_v1 = vsub.f32 1.0, %v730_v4  ;;  %v2619_v40 = vmul.f32 %v819_v51, %v3118_v44  ;;  %v848_v45 = vmax.f32 %v784_v61, 0.0  ;;  %954 = vmatpush.msra.mxu0 %v2545_v17  ;;  %v2623_v9 = vpop.permute.xlu1 %230  ;;  %v3119_v11 = vld [vmem:[#allocation31_spill] sm:$0xff] }
 0x107   :  { %994 = vmatpush.msra.mxu2 %v2548_v32  ;;  %v795_v12 = vsub.f32 1.0, %v731_v47  ;;  %v792_v46 = vsub.f32 1.0, %v728_v38  ;;  %v2625_v56 = vpop.permute.xlu0 %226  ;;  %v630_v30 = vsub.f32 %v2623_v9, %v2207_v60  ;;  %v631_v58 = vsub.f32 %v2623_v9, %v2209_v36  ;;  %v3120_v25 = vld [vmem:[#allocation59_spill] sm:$0xff]  ;;  %v3121_v38 = vld [vmem:[#allocation60_spill] sm:$0xff] }
 0x108   :  { %v793_v54 = vsub.f32 1.0, %v729_v27  ;;  %v858_v0 = vmax.f32 %v794_v1, 0.0  ;;  %v2632_v55 = vmul.f32 %v848_v45, %v3119_v11  ;;  %v628_v4 = vsub.f32 %v2625_v56, %v2207_v60  ;;  %v3123_v2 = vld [vmem:[#allocation63_spill] sm:$0xff] }
 0x109   :  { %v859_v17 = vmax.f32 %v795_v12, 0.0  ;;  %v856_v32 = vmax.f32 %v792_v46, 0.0  ;;  %v694_v51 = vand.u32 2147483647, %v630_v30  ;;  %v695_v61 = vand.u32 2147483647, %v631_v58 }
 0x10a   :  { %v857_v63 = vmax.f32 %v793_v54, 0.0  ;;  %v922_v5 = vmul.f32 %v858_v0, %v3120_v25  ;;  %v629_v47 = vsub.f32 %v2625_v56, %v2209_v36  ;;  %v692_v45 = vand.u32 2147483647, %v628_v4  ;;  %v3124_v30 = vld [vmem:[#allocation11_spill] sm:$0xff]  ;;  %v3125_v58 = vld [vmem:[#allocation66_spill] sm:$0xff] }
 0x10b   :  { %v923_v27 = vmul.f32 %v859_v17, %v3121_v38  ;;  %v920_v1 = vmul.f32 %v856_v32, %v3122_v23  ;;  %v758_v12 = vsub.f32 1.0, %v694_v51  ;;  %v759_v46 = vsub.f32 1.0, %v695_v61  ;;  %v3126_v17 = vld [vmem:[#allocation46_spill] sm:$0xff]  ;;  %v3129_v23 = vld [vmem:[#allocation13_spill] sm:$0xff] }
 0x10c   :  { %v921_v44 = vmul.f32 %v857_v63, %v3123_v2  ;;  %973 = vmatpush.msra.mxu1 %v922_v5  ;;  %v693_v54 = vand.u32 2147483647, %v629_v47  ;;  %v849_v11 = vmax.f32 %v785_v18, 0.0  ;;  %v756_v20 = vsub.f32 1.0, %v692_v45  ;;  %v3127_v5 = vld [vmem:[#allocation36_spill] sm:$0xff]  ;;  %v3130_v2 = vld [vmem:[#allocation39_spill] sm:$0xff] }
 0x10d   :  { %1013 = vmatpush.msra.mxu3 %v923_v27  ;;  %v1332_v0 = vsub.f32 %v2429_v14, %v2221_v21  ;;  %v1109_v25 = vsub.f32 %v3125_v58, %v3124_v30  ;;  %v1370_v38 = vsub.f32 %v3126_v17, %v2221_v21  ;;  %v822_v32 = vmax.f32 %v758_v12, 0.0 }
 0x10e   :  { %974 = vmatpush.msra.mxu1 %v920_v1  ;;  %v823_v63 = vmax.f32 %v759_v46, 0.0  ;;  %v757_v4 = vsub.f32 1.0, %v693_v54  ;;  %v2649_v51 = vmul.f32 %v849_v11, %v3127_v5  ;;  %v2651_v18 = vpop.permute.xlu1 %290  ;;  %v820_v61 = vmax.f32 %v756_v20, 0.0  ;;  %v3132_v1 = vld [vmem:[#allocation12_spill] sm:$0xff]  ;;  %v3133_v46 = vld [vmem:[#allocation14_spill] sm:$0xff]  ;;  %v3134_v20 = vld [vmem:[#allocation25_spill] sm:$0xff] }
 0x10f   :  { %1014 = vmatpush.msra.mxu3 %v921_v44  ;;  %3128 = vst [vmem:[#allocation40_spill] sm:$0xff] %v2651_v18  ;;  %v1396_v47 = vand.u32 2147483647, %v1332_v0  ;;  %v1173_v27 = vand.u32 2147483647, %v1109_v25  ;;  %v1072_v45 = vsub.f32 %v3130_v2, %v3129_v23  ;;  %v2656_v48 = vpop.permute.xlu0 %286  ;;  %v886_v12 = vmul.f32 %v822_v32, %v3132_v1  ;;  %v3135_v32 = vld [vmem:[#allocation26_spill] sm:$0xff] }
 0x110   :  { %975 = vmatpush.msra.mxu1 %v2578_v43  ;;  %3131 = vst [vmem:[#allocation41_spill] sm:$0xff] %v2656_v48  ;;  %v887_v54 = vmul.f32 %v823_v63, %v3133_v46  ;;  %v821_v10 = vmax.f32 %v757_v4, 0.0  ;;  %v660_v44 = vsub.f32 %v2651_v18, %v2207_v60  ;;  %v884_v11 = vmul.f32 %v820_v61, %v3134_v20 }
 0x111   :  { %1015 = vmatpush.msra.mxu3 %v2581_v24  ;;  %v661_v0 = vsub.f32 %v2651_v18, %v2209_v36  ;;  %v658_v43 = vsub.f32 %v2656_v48, %v2207_v60  ;;  %v659_v25 = vsub.f32 %v2656_v48, %v2209_v36  ;;  %955 = vmatpush.msra.mxu0 %v886_v12  ;;  %v1460_v5 = vsub.f32 1.0, %v1396_v47  ;;  %v3136_v47 = vld [vmem:[#allocation65_spill] sm:$0xff] }
 0x112   :  { %995 = vmatpush.msra.mxu2 %v887_v54  ;;  %v885_v63 = vmul.f32 %v821_v10, %v3135_v32  ;;  %v724_v4 = vand.u32 2147483647, %v660_v44  ;;  %v1237_v2 = vsub.f32 1.0, %v1173_v27  ;;  %v1333_v61 = vsub.f32 %v2429_v14, %v2223_v50 }
 0x113   :  { %v725_v1 = vand.u32 2147483647, %v661_v0  ;;  %v722_v24 = vand.u32 2147483647, %v658_v43  ;;  %v723_v46 = vand.u32 2147483647, %v659_v25  ;;  %956 = vmatpush.msra.mxu0 %v884_v11 }
 0x114   :  { %996 = vmatpush.msra.mxu2 %v885_v63  ;;  %v788_v20 = vsub.f32 1.0, %v724_v4  ;;  %v1524_v18 = vmax.f32 %v1460_v5, 0.0  ;;  %v1301_v13 = vmax.f32 %v1237_v2, 0.0  ;;  %v1434_v37 = vand.u32 2147483647, %v1370_v38  ;;  %v3138_v63 = vld [vmem:[#allocation50_spill] sm:$0xff] }
 0x115   :  { %v789_v48 = vsub.f32 1.0, %v725_v1  ;;  %v786_v12 = vsub.f32 1.0, %v722_v24  ;;  %v787_v54 = vsub.f32 1.0, %v723_v46  ;;  %v1136_v33 = vand.u32 2147483647, %v1072_v45  ;;  %957 = vmatpush.msra.mxu0 %v2616_v22  ;;  %v3140_v1 = vld [vmem:[#allocation53_spill] sm:$0xff] }
 0x116   :  { %997 = vmatpush.msra.mxu2 %v2619_v40  ;;  %v852_v10 = vmax.f32 %v788_v20, 0.0  ;;  %v2676_v27 = vmul.f32 %v1524_v18, %v3136_v47  ;;  %v1498_v44 = vsub.f32 1.0, %v1434_v37  ;;  %v1397_v14 = vand.u32 2147483647, %v1333_v61  ;;  %v2678_v11 = vpop.permute.xlu1 %218  ;;  %v3141_v46 = vld [vmem:[#allocation54_spill] sm:$0xff] }
 0x117   :  { %3137 = vst [vmem:[#allocation47_spill] sm:$0xff] %v2678_v11  ;;  %v853_v0 = vmax.f32 %v789_v48, 0.0  ;;  %v850_v43 = vmax.f32 %v786_v12, 0.0  ;;  %v851_v25 = vmax.f32 %v787_v54, 0.0  ;;  %v1200_v38 = vsub.f32 1.0, %v1136_v33  ;;  %v215_v32 = vpop.permute.xlu0 %214  ;;  %v3139_v33 = vld [vmem:[#allocation51_spill] sm:$0xff] }
 0x118   :  { %v916_v4 = vmul.f32 %v852_v10, %v3138_v63  ;;  %v624_v22 = vsub.f32 %v2678_v11, %v2207_v60  ;;  %v625_v40 = vsub.f32 %v2678_v11, %v2209_v36  ;;  %v1562_v45 = vmax.f32 %v1498_v44, 0.0 }
 0x119   :  { %v622_v18 = vsub.f32 %v215_v32, %v2207_v60  ;;  %v623_v37 = vsub.f32 %v215_v32, %v2209_v36  ;;  %v1308_v5 = vsub.f32 %v215_v32, %v2221_v21  ;;  %v1309_v48 = vsub.f32 %v215_v32, %v2223_v50 }
 0x11a   :  { %976 = vmatpush.msra.mxu1 %v916_v4  ;;  %v917_v2 = vmul.f32 %v853_v0, %v3139_v33  ;;  %v914_v24 = vmul.f32 %v850_v43, %v3140_v1  ;;  %v915_v61 = vmul.f32 %v851_v25, %v3141_v46  ;;  %v688_v20 = vand.u32 2147483647, %v624_v22  ;;  %v3143_v1 = vld [vmem:[#allocation30_spill] sm:$0xff]  ;;  %v3144_v46 = vld [vmem:[#allocation23_spill] sm:$0xff] }
 0x11b   :  { %v686_v12 = vand.u32 2147483647, %v622_v18  ;;  %v687_v54 = vand.u32 2147483647, %v623_v37  ;;  %v2692_v10 = vand.u32 2147483647, %v1308_v5  ;;  %v2694_v47 = vmul.f32 %v1562_v45, %v1301_v13 }
 0x11c   :  { %v2696_v44 = vand.u32 2147483647, %v1309_v48  ;;  %1016 = vmatpush.msra.mxu3 %v917_v2  ;;  %977 = vmatpush.msra.mxu1 %v914_v24  ;;  %v752_v63 = vsub.f32 1.0, %v688_v20  ;;  %v689_v32 = vand.u32 2147483647, %v625_v40  ;;  %v1264_v4 = vmax.f32 %v1200_v38, 0.0 }
 0x11d   :  { %v750_v11 = vsub.f32 1.0, %v686_v12  ;;  %v751_v0 = vsub.f32 1.0, %v687_v54  ;;  %v1461_v33 = vsub.f32 1.0, %v1397_v14  ;;  %v1110_v43 = vsub.f32 %v3125_v58, %v3129_v23  ;;  %v3142_v45 = vld [vmem:[#allocation8_spill] sm:$0xff] }
 0x11e   :  { %1017 = vmatpush.msra.mxu3 %v915_v61  ;;  %978 = vmatpush.msra.mxu1 %v2632_v55  ;;  %v816_v25 = vmax.f32 %v752_v63, 0.0  ;;  %v753_v22 = vsub.f32 1.0, %v689_v32  ;;  %v1371_v13 = vsub.f32 %v3126_v17, %v2223_v50  ;;  %v1069_v18 = vsub.f32 %v3142_v45, %v3124_v30  ;;  %v279_v37 = vpop.permute.xlu1 %278  ;;  %v3145_v20 = vld [vmem:[#allocation24_spill] sm:$0xff] }
 0x11f   :  { %v814_v40 = vmax.f32 %v750_v11, 0.0  ;;  %v815_v38 = vmax.f32 %v751_v0, 0.0  ;;  %v1525_v5 = vmax.f32 %v1461_v33, 0.0  ;;  %v1174_v48 = vand.u32 2147483647, %v1110_v43 }
 0x120   :  { %1018 = vmatpush.msra.mxu3 %v2649_v51  ;;  %v654_v58 = vsub.f32 %v279_v37, %v2207_v60  ;;  %v655_v14 = vsub.f32 %v279_v37, %v2209_v36  ;;  %v1340_v55 = vsub.f32 %v279_v37, %v2221_v21  ;;  %v1341_v2 = vsub.f32 %v279_v37, %v2223_v50  ;;  %v3146_v60 = vld [vmem:[#allocation32_spill] sm:$0xff] }
 0x121   :  { %v880_v17 = vmul.f32 %v816_v25, %v3143_v1  ;;  %v817_v24 = vmax.f32 %v753_v22, 0.0  ;;  %v878_v61 = vmul.f32 %v814_v40, %v3144_v46  ;;  %v879_v11 = vmul.f32 %v815_v38, %v3145_v20 }
 0x122   :  { %v718_v12 = vand.u32 2147483647, %v654_v58  ;;  %v719_v54 = vand.u32 2147483647, %v655_v14  ;;  %v2713_v63 = vand.u32 2147483647, %v1340_v55  ;;  %v1589_v51 = vmul.f32 %v1525_v5, %v1264_v4 }
 0x123   :  { %v2715_v32 = vand.u32 2147483647, %v1341_v2  ;;  %958 = vmatpush.msra.mxu0 %v880_v17  ;;  %v881_v36 = vmul.f32 %v817_v24, %v3146_v60  ;;  %v1238_v0 = vsub.f32 1.0, %v1174_v48  ;;  %v1435_v33 = vand.u32 2147483647, %v1371_v13  ;;  %v3147_v5 = vld [vmem:[#allocation52_spill] sm:$0xff] }
 0x124   :  { %v782_v43 = vsub.f32 1.0, %v718_v12  ;;  %v783_v37 = vsub.f32 1.0, %v719_v54  ;;  %v1133_v25 = vand.u32 2147483647, %v1069_v18  ;;  %v1330_v22 = vsub.f32 %v2458_v49, %v2221_v21  ;;  %v3148_v24 = vld [vmem:[#allocation56_spill] sm:$0xff] }
 0x125   :  { %998 = vmatpush.msra.mxu2 %v881_v36  ;;  %959 = vmatpush.msra.mxu0 %v878_v61  ;;  %v1302_v40 = vmax.f32 %v1238_v0, 0.0  ;;  %v1499_v38 = vsub.f32 1.0, %v1435_v33  ;;  %v1107_v4 = vsub.f32 %v2361_v62, %v3124_v30  ;;  %v1368_v58 = vsub.f32 %v3147_v5, %v2221_v21  ;;  %v3149_v61 = vld [vmem:[#allocation64_spill] sm:$0xff] }
 0x126   :  { %v846_v48 = vmax.f32 %v782_v43, 0.0  ;;  %v847_v13 = vmax.f32 %v783_v37, 0.0  ;;  %v1197_v14 = vsub.f32 1.0, %v1133_v25  ;;  %v1394_v55 = vand.u32 2147483647, %v1330_v22  ;;  %v3150_v25 = vld [vmem:[#allocation28_spill] sm:$0xff] }
 0x127   :  { %1636 = vmatpush.msrb.mxu0 %v2388_v19  ;;  %999 = vmatpush.msra.mxu2 %v879_v11  ;;  %v1563_v18 = vmax.f32 %v1499_v38, 0.0  ;;  %v1171_v2 = vand.u32 2147483647, %v1107_v4  ;;  %v1432_v1 = vand.u32 2147483647, %v1368_v58  ;;  %v1070_v17 = vsub.f32 %v3142_v45, %v3129_v23 }
 0x128   :  { %v910_v46 = vmul.f32 %v846_v48, %v3148_v24  ;;  %v911_v20 = vmul.f32 %v847_v13, %v3149_v61  ;;  %v1261_v19 = vmax.f32 %v1197_v14, 0.0  ;;  %v1458_v12 = vsub.f32 1.0, %v1394_v55 }
 0x129   :  { %1676 = vmatpush.msrb.mxu2 %v2391_v39  ;;  %1637 = vmatpush.msrb.mxu0 %v2483_v16  ;;  %v1627_v54 = vmul.f32 %v1563_v18, %v1302_v40  ;;  %v1235_v60 = vsub.f32 1.0, %v1171_v2  ;;  %v1496_v36 = vsub.f32 1.0, %v1432_v1  ;;  %v1134_v11 = vand.u32 2147483647, %v1070_v17 }
 0x12a   :  { %v1522_v0 = vmax.f32 %v1458_v12, 0.0  ;;  %v1331_v39 = vsub.f32 %v2458_v49, %v2223_v50  ;;  %v1108_v16 = vsub.f32 %v2361_v62, %v3129_v23  ;;  %v1369_v45 = vsub.f32 %v3147_v5, %v2223_v50  ;;  %979 = vmatpush.msra.mxu1 %v910_v46  ;;  %1019 = vmatpush.msra.mxu3 %v911_v20 }
 0x12b   :  { %1677 = vmatpush.msrb.mxu2 %v2492_v31  ;;  %1638 = vmatpush.msrb.mxu0 %v2586_v8  ;;  %v1299_v33 = vmax.f32 %v1235_v60, 0.0  ;;  %v1560_v43 = vmax.f32 %v1496_v36, 0.0  ;;  %v1198_v37 = vsub.f32 1.0, %v1134_v11  ;;  %v1067_v31 = vsub.f32 %v3150_v25, %v3124_v30 }
 0x12c   :  { %v1586_v8 = vmul.f32 %v1522_v0, %v1261_v19  ;;  %v1395_v49 = vand.u32 2147483647, %v1331_v39  ;;  %v1172_v22 = vand.u32 2147483647, %v1108_v16  ;;  %v1433_v40 = vand.u32 2147483647, %v1369_v45  ;;  %1656 = vmatpush.msrb.mxu1 %v2694_v47  ;;  %1696 = vmatpush.msrb.mxu3 %v1627_v54 }
 0x12d   :  { %1678 = vmatpush.msrb.mxu2 %v2613_v59  ;;  %1639 = vmatpush.msrb.mxu0 %v2676_v27  ;;  %v1624_v62 = vmul.f32 %v1560_v43, %v1299_v33  ;;  %v1262_v38 = vmax.f32 %v1198_v37, 0.0  ;;  %v1131_v4 = vand.u32 2147483647, %v1067_v31  ;;  %v1328_v5 = vsub.f32 %v2496_v52, %v2221_v21  ;;  %v3151_v47 = vld [vmem:[#allocation61_spill] sm:$0xff] }
 0x12e   :  { %v1459_v58 = vsub.f32 1.0, %v1395_v49  ;;  %v1236_v48 = vsub.f32 1.0, %v1172_v22  ;;  %v1497_v59 = vsub.f32 1.0, %v1433_v40  ;;  %v1105_v27 = vsub.f32 %v2393_v41, %v3124_v30  ;;  %v3152_v43 = vld [vmem:[#allocation29_spill] sm:$0xff] }
 0x12f   :  { %1679 = vmatpush.msrb.mxu2 %v1589_v51  ;;  %1640 = vmatpush.msrb.mxu0 %v1586_v8  ;;  %v1195_v13 = vsub.f32 1.0, %v1131_v4  ;;  %v1392_v14 = vand.u32 2147483647, %v1328_v5  ;;  %v1366_v55 = vsub.f32 %v3151_v47, %v2221_v21  ;;  %v1068_v18 = vsub.f32 %v3150_v25, %v3129_v23  ;;  %v3153_v5 = vld [vmem:[#allocation70_spill] sm:$0xff] }
 0x130   :  { %1657 = vmatpush.msrb.mxu1 %v1624_v62  ;;  %v1523_v2 = vmax.f32 %v1459_v58, 0.0  ;;  %v1300_v1 = vmax.f32 %v1236_v48, 0.0  ;;  %v1561_v17 = vmax.f32 %v1497_v59, 0.0  ;;  %v1169_v51 = vand.u32 2147483647, %v1105_v27 }
 0x131   :  { %v1259_v24 = vmax.f32 %v1195_v13, 0.0  ;;  %v1456_v46 = vsub.f32 1.0, %v1392_v14  ;;  %v1430_v61 = vand.u32 2147483647, %v1366_v55  ;;  %v1132_v20 = vand.u32 2147483647, %v1068_v18 }
 0x132   :  { %v1587_v19 = vmul.f32 %v1523_v2, %v1262_v38  ;;  %v1625_v12 = vmul.f32 %v1561_v17, %v1300_v1  ;;  %v1233_v54 = vsub.f32 1.0, %v1169_v51  ;;  %v1329_v60 = vsub.f32 %v2496_v52, %v2223_v50 }
 0x133   :  { %v1520_v36 = vmax.f32 %v1456_v46, 0.0  ;;  %v1494_v11 = vsub.f32 1.0, %v1430_v61  ;;  %v1196_v0 = vsub.f32 1.0, %v1132_v20  ;;  %v1106_v39 = vsub.f32 %v2393_v41, %v3129_v23 }
 0x134   :  { %1680 = vmatpush.msrb.mxu2 %v1587_v19  ;;  %1697 = vmatpush.msrb.mxu3 %v1625_v12  ;;  %v1297_v16 = vmax.f32 %v1233_v54, 0.0  ;;  %v1393_v45 = vand.u32 2147483647, %v1329_v60  ;;  %v1367_v33 = vsub.f32 %v3151_v47, %v2223_v50  ;;  %v1065_v37 = vsub.f32 %v3152_v43, %v3124_v30 }
 0x135   :  { %v1584_v25 = vmul.f32 %v1520_v36, %v1259_v24  ;;  %v1558_v31 = vmax.f32 %v1494_v11, 0.0  ;;  %v1260_v8 = vmax.f32 %v1196_v0, 0.0  ;;  %v1170_v52 = vand.u32 2147483647, %v1106_v39 }
 0x136   :  { %v1457_v49 = vsub.f32 1.0, %v1393_v45  ;;  %v1431_v22 = vand.u32 2147483647, %v1367_v33  ;;  %v1129_v40 = vand.u32 2147483647, %v1065_v37  ;;  %v1326_v41 = vsub.f32 %v2397_v28, %v2221_v21 }
 0x137   :  { %1641 = vmatpush.msrb.mxu0 %v1584_v25  ;;  %v1622_v62 = vmul.f32 %v1558_v31, %v1297_v16  ;;  %v1234_v38 = vsub.f32 1.0, %v1170_v52  ;;  %v1103_v4 = vsub.f32 %v2425_v26, %v3124_v30  ;;  %v1364_v58 = vsub.f32 %v3153_v5, %v2221_v21 }
 0x138   :  { %v1521_v48 = vmax.f32 %v1457_v49, 0.0  ;;  %v1495_v59 = vsub.f32 1.0, %v1431_v22  ;;  %v1193_v27 = vsub.f32 1.0, %v1129_v40  ;;  %v1390_v13 = vand.u32 2147483647, %v1326_v41 }
 0x139   :  { %1658 = vmatpush.msrb.mxu1 %v1622_v62  ;;  %v1298_v14 = vmax.f32 %v1234_v38, 0.0  ;;  %v1167_v47 = vand.u32 2147483647, %v1103_v4  ;;  %v1428_v55 = vand.u32 2147483647, %v1364_v58  ;;  %v1066_v18 = vsub.f32 %v3152_v43, %v3129_v23  ;;  %v3154_v43 = vld [vmem:[#allocation7_spill] sm:$0xff] }
 0x13a   :  { %v1585_v2 = vmul.f32 %v1521_v48, %v1260_v8  ;;  %v1559_v1 = vmax.f32 %v1495_v59, 0.0  ;;  %v1257_v17 = vmax.f32 %v1193_v27, 0.0  ;;  %v1454_v51 = vsub.f32 1.0, %v1390_v13 }
 0x13b   :  { %v1231_v24 = vsub.f32 1.0, %v1167_v47  ;;  %v1492_v46 = vsub.f32 1.0, %v1428_v55  ;;  %v1130_v61 = vand.u32 2147483647, %v1066_v18  ;;  %v1327_v20 = vsub.f32 %v2397_v28, %v2223_v50 }
 0x13c   :  { %1681 = vmatpush.msrb.mxu2 %v1585_v2  ;;  %v1623_v19 = vmul.f32 %v1559_v1, %v1298_v14  ;;  %v1518_v12 = vmax.f32 %v1454_v51, 0.0  ;;  %v1104_v54 = vsub.f32 %v2425_v26, %v3129_v23  ;;  %v1365_v60 = vsub.f32 %v3153_v5, %v2223_v50 }
 0x13d   :  { %v1295_v36 = vmax.f32 %v1231_v24, 0.0  ;;  %v1556_v11 = vmax.f32 %v1492_v46, 0.0  ;;  %v1194_v0 = vsub.f32 1.0, %v1130_v61  ;;  %v1391_v39 = vand.u32 2147483647, %v1327_v20 }
 0x13e   :  { %1698 = vmatpush.msrb.mxu3 %v1623_v19  ;;  %v1582_v16 = vmul.f32 %v1518_v12, %v1257_v17  ;;  %v1168_v45 = vand.u32 2147483647, %v1104_v54  ;;  %v1429_v33 = vand.u32 2147483647, %v1365_v60  ;;  %v1063_v28 = vsub.f32 %v3154_v43, %v3124_v30  ;;  %v3155_v19 = vld [vmem:[#allocation21_spill] sm:$0xff] }
 0x13f   :  { %v1620_v37 = vmul.f32 %v1556_v11, %v1295_v36  ;;  %v1258_v25 = vmax.f32 %v1194_v0, 0.0  ;;  %v1455_v31 = vsub.f32 1.0, %v1391_v39  ;;  %v1324_v26 = vsub.f32 %v2427_v53, %v2221_v21 }
 0x140   :  { %1642 = vmatpush.msrb.mxu0 %v1582_v16  ;;  %v1232_v8 = vsub.f32 1.0, %v1168_v45  ;;  %v1493_v52 = vsub.f32 1.0, %v1429_v33  ;;  %v1127_v49 = vand.u32 2147483647, %v1063_v28  ;;  %v1101_v22 = vsub.f32 %v2454_v35, %v3124_v30  ;;  %v3156_v33 = vld [vmem:[#allocation42_spill] sm:$0xff] }
 0x141   :  { %1659 = vmatpush.msrb.mxu1 %v1620_v37  ;;  %v1519_v40 = vmax.f32 %v1455_v31, 0.0  ;;  %v1388_v41 = vand.u32 2147483647, %v1324_v26  ;;  %v1362_v62 = vsub.f32 %v2365_v7, %v2221_v21  ;;  %v1064_v38 = vsub.f32 %v3154_v43, %v3129_v23 }
 0x142   :  { %v1296_v4 = vmax.f32 %v1232_v8, 0.0  ;;  %v1557_v5 = vmax.f32 %v1493_v52, 0.0  ;;  %v1191_v58 = vsub.f32 1.0, %v1127_v49  ;;  %v1165_v48 = vand.u32 2147483647, %v1101_v22 }
 0x143   :  { %v1583_v59 = vmul.f32 %v1519_v40, %v1258_v25  ;;  %v1452_v27 = vsub.f32 1.0, %v1388_v41  ;;  %v1426_v13 = vand.u32 2147483647, %v1362_v62  ;;  %v1128_v14 = vand.u32 2147483647, %v1064_v38 }
 0x144   :  { %v1621_v47 = vmul.f32 %v1557_v5, %v1296_v4  ;;  %v1255_v55 = vmax.f32 %v1191_v58, 0.0  ;;  %v1229_v18 = vsub.f32 1.0, %v1165_v48  ;;  %v1325_v2 = vsub.f32 %v2427_v53, %v2223_v50 }
 0x145   :  { %1682 = vmatpush.msrb.mxu2 %v1583_v59  ;;  %v1516_v1 = vmax.f32 %v1452_v27, 0.0  ;;  %v1490_v17 = vsub.f32 1.0, %v1426_v13  ;;  %v1192_v51 = vsub.f32 1.0, %v1128_v14  ;;  %v1102_v24 = vsub.f32 %v2454_v35, %v3129_v23 }
 0x146   :  { %1699 = vmatpush.msrb.mxu3 %v1621_v47  ;;  %v1293_v46 = vmax.f32 %v1229_v18, 0.0  ;;  %v1389_v61 = vand.u32 2147483647, %v1325_v2  ;;  %v1363_v20 = vsub.f32 %v2365_v7, %v2223_v50  ;;  %v1061_v12 = vsub.f32 %v3155_v19, %v3124_v30 }
 0x147   :  { %v1580_v54 = vmul.f32 %v1516_v1, %v1255_v55  ;;  %v1554_v60 = vmax.f32 %v1490_v17, 0.0  ;;  %v1256_v36 = vmax.f32 %v1192_v51, 0.0  ;;  %v1166_v53 = vand.u32 2147483647, %v1102_v24  ;;  %v3157_v51 = vld [vmem:[#allocation22_spill] sm:$0xff] }
 0x148   :  { %v1453_v11 = vsub.f32 1.0, %v1389_v61  ;;  %v1427_v0 = vand.u32 2147483647, %v1363_v20  ;;  %v1125_v39 = vand.u32 2147483647, %v1061_v12  ;;  %v1322_v16 = vsub.f32 %v2557_v29, %v2221_v21 }
 0x149   :  { %1643 = vmatpush.msrb.mxu0 %v1580_v54  ;;  %v1618_v35 = vmul.f32 %v1554_v60, %v1293_v46  ;;  %v1230_v45 = vsub.f32 1.0, %v1166_v53  ;;  %v1099_v43 = vsub.f32 %v3156_v33, %v3124_v30  ;;  %v1360_v7 = vsub.f32 %v2487_v3, %v2221_v21  ;;  %v3158_v54 = vld [vmem:[#allocation57_spill] sm:$0xff] }
 0x14a   :  { %v1517_v28 = vmax.f32 %v1453_v11, 0.0  ;;  %v1491_v37 = vsub.f32 1.0, %v1427_v0  ;;  %v1189_v25 = vsub.f32 1.0, %v1125_v39  ;;  %v1386_v31 = vand.u32 2147483647, %v1322_v16 }
 0x14b   :  { %1660 = vmatpush.msrb.mxu1 %v1618_v35  ;;  %v1294_v26 = vmax.f32 %v1230_v45, 0.0  ;;  %v1163_v8 = vand.u32 2147483647, %v1099_v43  ;;  %v1424_v52 = vand.u32 2147483647, %v1360_v7  ;;  %v1062_v49 = vsub.f32 %v3155_v19, %v3129_v23 }
 0x14c   :  { %v1581_v22 = vmul.f32 %v1517_v28, %v1256_v36  ;;  %v1555_v40 = vmax.f32 %v1491_v37, 0.0  ;;  %v1253_v41 = vmax.f32 %v1189_v25, 0.0  ;;  %v1450_v62 = vsub.f32 1.0, %v1386_v31 }
 0x14d   :  { %v1227_v38 = vsub.f32 1.0, %v1163_v8  ;;  %v1488_v4 = vsub.f32 1.0, %v1424_v52  ;;  %v1126_v5 = vand.u32 2147483647, %v1062_v49  ;;  %v1323_v58 = vsub.f32 %v2557_v29, %v2223_v50 }
 0x14e   :  { %1683 = vmatpush.msrb.mxu2 %v1581_v22  ;;  %v1619_v48 = vmul.f32 %v1555_v40, %v1294_v26  ;;  %v1514_v59 = vmax.f32 %v1450_v62, 0.0  ;;  %v1100_v27 = vsub.f32 %v3156_v33, %v3129_v23  ;;  %v1361_v13 = vsub.f32 %v2487_v3, %v2223_v50 }
 0x14f   :  { %v1291_v14 = vmax.f32 %v1227_v38, 0.0  ;;  %v1552_v47 = vmax.f32 %v1488_v4, 0.0  ;;  %v1190_v55 = vsub.f32 1.0, %v1126_v5  ;;  %v1387_v18 = vand.u32 2147483647, %v1323_v58  ;;  %v3159_v38 = vld [vmem:[#allocation6_spill] sm:$0xff] }
 0x150   :  { %1700 = vmatpush.msrb.mxu3 %v1619_v48  ;;  %v1578_v2 = vmul.f32 %v1514_v59, %v1253_v41  ;;  %v1164_v1 = vand.u32 2147483647, %v1100_v27  ;;  %v1425_v17 = vand.u32 2147483647, %v1361_v13  ;;  %v1059_v29 = vsub.f32 %v3157_v51, %v3124_v30 }
 0x151   :  { %v1616_v24 = vmul.f32 %v1552_v47, %v1291_v14  ;;  %v1254_v46 = vmax.f32 %v1190_v55, 0.0  ;;  %v1451_v61 = vsub.f32 1.0, %v1387_v18  ;;  %v1320_v20 = vsub.f32 %v2559_v15, %v2221_v21  ;;  %v3160_v18 = vld [vmem:[#allocation58_spill] sm:$0xff] }
 0x152   :  { %1644 = vmatpush.msrb.mxu0 %v1578_v2  ;;  %v1228_v19 = vsub.f32 1.0, %v1164_v1  ;;  %v1489_v3 = vsub.f32 1.0, %v1425_v17  ;;  %v1123_v12 = vand.u32 2147483647, %v1059_v29  ;;  %v1097_v60 = vsub.f32 %v3158_v54, %v3124_v30 }
 0x153   :  { %1661 = vmatpush.msrb.mxu1 %v1616_v24  ;;  %v1515_v36 = vmax.f32 %v1451_v61, 0.0  ;;  %v1384_v53 = vand.u32 2147483647, %v1320_v20  ;;  %v1358_v11 = vsub.f32 %v2522_v57, %v2221_v21  ;;  %v1060_v0 = vsub.f32 %v3157_v51, %v3129_v23 }
 0x154   :  { %v1292_v39 = vmax.f32 %v1228_v19, 0.0  ;;  %v1553_v16 = vmax.f32 %v1489_v3, 0.0  ;;  %v1187_v35 = vsub.f32 1.0, %v1123_v12  ;;  %v1161_v45 = vand.u32 2147483647, %v1097_v60 }
 0x155   :  { %v1579_v33 = vmul.f32 %v1515_v36, %v1254_v46  ;;  %v1448_v43 = vsub.f32 1.0, %v1384_v53  ;;  %v1422_v7 = vand.u32 2147483647, %v1358_v11  ;;  %v1124_v28 = vand.u32 2147483647, %v1060_v0 }
 0x156   :  { %v1617_v37 = vmul.f32 %v1553_v16, %v1292_v39  ;;  %v1251_v25 = vmax.f32 %v1187_v35, 0.0  ;;  %v1225_v31 = vsub.f32 1.0, %v1161_v45  ;;  %v1321_v26 = vsub.f32 %v2559_v15, %v2223_v50 }
 0x157   :  { %1684 = vmatpush.msrb.mxu2 %v1579_v33  ;;  %v1512_v8 = vmax.f32 %v1448_v43, 0.0  ;;  %v1486_v52 = vsub.f32 1.0, %v1422_v7  ;;  %v1188_v49 = vsub.f32 1.0, %v1124_v28  ;;  %v1098_v22 = vsub.f32 %v3158_v54, %v3129_v23 }
 0x158   :  { %1701 = vmatpush.msrb.mxu3 %v1617_v37  ;;  %v1289_v40 = vmax.f32 %v1225_v31, 0.0  ;;  %v1385_v41 = vand.u32 2147483647, %v1321_v26  ;;  %v1359_v62 = vsub.f32 %v2522_v57, %v2223_v50  ;;  %v1057_v4 = vsub.f32 %v3159_v38, %v3124_v30  ;;  %v3161_v31 = vld [vmem:[#allocation5_spill] sm:$0xff] }
 0x159   :  { %v1576_v5 = vmul.f32 %v1512_v8, %v1251_v25  ;;  %v1550_v58 = vmax.f32 %v1486_v52, 0.0  ;;  %v1252_v48 = vmax.f32 %v1188_v49, 0.0  ;;  %v1162_v15 = vand.u32 2147483647, %v1098_v22 }
 0x15a   :  { %v1449_v59 = vsub.f32 1.0, %v1385_v41  ;;  %v1423_v27 = vand.u32 2147483647, %v1359_v62  ;;  %v1121_v13 = vand.u32 2147483647, %v1057_v4  ;;  %v1318_v14 = vsub.f32 %v2485_v6, %v2221_v21  ;;  %v3162_v41 = vld [vmem:[#allocation38_spill] sm:$0xff] }
 0x15b   :  { %1645 = vmatpush.msrb.mxu0 %v1576_v5  ;;  %v1614_v47 = vmul.f32 %v1550_v58, %v1289_v40  ;;  %v1226_v55 = vsub.f32 1.0, %v1162_v15  ;;  %v1095_v2 = vsub.f32 %v3160_v18, %v3124_v30  ;;  %v1356_v57 = vsub.f32 %v2526_v42, %v2221_v21 }
 0x15c   :  { %v1513_v1 = vmax.f32 %v1449_v59, 0.0  ;;  %v1487_v17 = vsub.f32 1.0, %v1423_v27  ;;  %v1185_v51 = vsub.f32 1.0, %v1121_v13  ;;  %v1382_v29 = vand.u32 2147483647, %v1318_v14 }
 0x15d   :  { %1662 = vmatpush.msrb.mxu1 %v1614_v47  ;;  %v1290_v24 = vmax.f32 %v1226_v55, 0.0  ;;  %v1159_v46 = vand.u32 2147483647, %v1095_v2  ;;  %v1420_v61 = vand.u32 2147483647, %v1356_v57  ;;  %v1058_v20 = vsub.f32 %v3159_v38, %v3129_v23 }
 0x15e   :  { %v1577_v19 = vmul.f32 %v1513_v1, %v1252_v48  ;;  %v1551_v3 = vmax.f32 %v1487_v17, 0.0  ;;  %v1249_v12 = vmax.f32 %v1185_v51, 0.0  ;;  %v1446_v54 = vsub.f32 1.0, %v1382_v29 }
 0x15f   :  { %v1223_v60 = vsub.f32 1.0, %v1159_v46  ;;  %v1484_v36 = vsub.f32 1.0, %v1420_v61  ;;  %v1122_v53 = vand.u32 2147483647, %v1058_v20  ;;  %v1319_v11 = vsub.f32 %v2485_v6, %v2223_v50 }
 0x160   :  { %1685 = vmatpush.msrb.mxu2 %v1577_v19  ;;  %v1615_v0 = vmul.f32 %v1551_v3, %v1290_v24  ;;  %v1510_v39 = vmax.f32 %v1446_v54, 0.0  ;;  %v1096_v16 = vsub.f32 %v3160_v18, %v3129_v23  ;;  %v1357_v35 = vsub.f32 %v2526_v42, %v2223_v50  ;;  %v3163_v19 = vld [vmem:[#allocation15_spill] sm:$0xff] }
 0x161   :  { %v1287_v45 = vmax.f32 %v1223_v60, 0.0  ;;  %v1548_v33 = vmax.f32 %v1484_v36, 0.0  ;;  %v1186_v43 = vsub.f32 1.0, %v1122_v53  ;;  %v1383_v7 = vand.u32 2147483647, %v1319_v11 }
 0x162   :  { %1702 = vmatpush.msrb.mxu3 %v1615_v0  ;;  %v1574_v28 = vmul.f32 %v1510_v39, %v1249_v12  ;;  %v1160_v37 = vand.u32 2147483647, %v1096_v16  ;;  %v1421_v25 = vand.u32 2147483647, %v1357_v35  ;;  %v1055_v6 = vsub.f32 %v3161_v31, %v3124_v30  ;;  %v3164_v35 = vld [vmem:[#allocation48_spill] sm:$0xff] }
 0x163   :  { %v1612_v26 = vmul.f32 %v1548_v33, %v1287_v45  ;;  %v1250_v8 = vmax.f32 %v1186_v43, 0.0  ;;  %v1447_v52 = vsub.f32 1.0, %v1383_v7  ;;  %v1316_v49 = vsub.f32 %v2623_v9, %v2221_v21 }
 0x164   :  { %1646 = vmatpush.msrb.mxu0 %v1574_v28  ;;  %v1224_v22 = vsub.f32 1.0, %v1160_v37  ;;  %v1485_v42 = vsub.f32 1.0, %v1421_v25  ;;  %v1119_v40 = vand.u32 2147483647, %v1055_v6  ;;  %v1093_v62 = vsub.f32 %v3162_v41, %v3124_v30 }
 0x165   :  { %1663 = vmatpush.msrb.mxu1 %v1612_v26  ;;  %v1511_v38 = vmax.f32 %v1447_v52, 0.0  ;;  %v1380_v4 = vand.u32 2147483647, %v1316_v49  ;;  %v1354_v5 = vsub.f32 %v2456_v34, %v2221_v21  ;;  %v1056_v58 = vsub.f32 %v3161_v31, %v3129_v23 }
 0x166   :  { %v1288_v48 = vmax.f32 %v1224_v22, 0.0  ;;  %v1549_v15 = vmax.f32 %v1485_v42, 0.0  ;;  %v1183_v59 = vsub.f32 1.0, %v1119_v40  ;;  %v1157_v27 = vand.u32 2147483647, %v1093_v62 }
 0x167   :  { %v1575_v13 = vmul.f32 %v1511_v38, %v1250_v8  ;;  %v1444_v14 = vsub.f32 1.0, %v1380_v4  ;;  %v1418_v47 = vand.u32 2147483647, %v1354_v5  ;;  %v1120_v55 = vand.u32 2147483647, %v1056_v58 }
 0x168   :  { %v1613_v18 = vmul.f32 %v1549_v15, %v1288_v48  ;;  %v1247_v2 = vmax.f32 %v1183_v59, 0.0  ;;  %v1221_v57 = vsub.f32 1.0, %v1157_v27  ;;  %v1317_v1 = vsub.f32 %v2623_v9, %v2223_v50  ;;  %v942_v42 = vld [vmem:[%s2953_s2] sm:$0xf]  ;;  %v943_v4 = vld [vmem:[%s2953_s2 + $0x8] sm:$0xf] }
 0x169   :  { %1686 = vmatpush.msrb.mxu2 %v1575_v13  ;;  %v1508_v17 = vmax.f32 %v1444_v14, 0.0  ;;  %v1482_v51 = vsub.f32 1.0, %v1418_v47  ;;  %v1184_v29 = vsub.f32 1.0, %v1120_v55  ;;  %v1094_v24 = vsub.f32 %v3162_v41, %v3129_v23  ;;  %960 = vmatmul.f32.vlgmr.msra.gmra.mxu0 %v942_v42 }
 0x16a   :  { %1703 = vmatpush.msrb.mxu3 %v1613_v18  ;;  %v1285_v46 = vmax.f32 %v1221_v57, 0.0  ;;  %v1381_v61 = vand.u32 2147483647, %v1317_v1  ;;  %v1355_v20 = vsub.f32 %v2456_v34, %v2223_v50  ;;  %v1053_v3 = vsub.f32 %v3163_v19, %v3124_v30  ;;  %v3165_v34 = vld [vmem:[#allocation67_spill] sm:$0xff]  ;;  %1000 = vmatmul.f32.vlgmr.msra.gmra.mxu2 %v942_v42  ;;  %v3166_v18 = vld [vmem:[#allocation9_spill] sm:$0xff] }
 0x16b   :  { %v1572_v12 = vmul.f32 %v1508_v17, %v1247_v2  ;;  %v1546_v54 = vmax.f32 %v1482_v51, 0.0  ;;  %v1248_v60 = vmax.f32 %v1184_v29, 0.0  ;;  %v1158_v9 = vand.u32 2147483647, %v1094_v24  ;;  %1020 = vmatmul.f32.vlgmr.msra.gmra.mxu3 %v943_v4  ;;  %980 = vmatmul.f32.vlgmr.msra.gmra.mxu1 %v943_v4  ;;  %v3167_v51 = vld [vmem:[#allocation17_spill] sm:$0xff] }
 0x16c   :  { %v1445_v36 = vsub.f32 1.0, %v1381_v61  ;;  %v1419_v53 = vand.u32 2147483647, %v1355_v20  ;;  %v1117_v11 = vand.u32 2147483647, %v1053_v3  ;;  %v1314_v0 = vsub.f32 %v2625_v56, %v2221_v21  ;;  %v3168_v20 = vld [vmem:[#allocation49_spill] sm:$0xff] }
 0x16d   :  { %1647 = vmatpush.msrb.mxu0 %v1572_v12  ;;  %v1610_v39 = vmul.f32 %v1546_v54, %v1285_v46  ;;  %v1222_v16 = vsub.f32 1.0, %v1158_v9  ;;  %v1091_v45 = vsub.f32 %v3164_v35, %v3124_v30  ;;  %v1352_v33 = vsub.f32 %v3165_v34, %v2221_v21  ;;  %v3169_v54 = vld [vmem:[#allocation68_spill] sm:$0xff] }
 0x16e   :  { %v1509_v43 = vmax.f32 %v1445_v36, 0.0  ;;  %v1483_v7 = vsub.f32 1.0, %v1419_v53  ;;  %v1181_v28 = vsub.f32 1.0, %v1117_v11  ;;  %v1378_v37 = vand.u32 2147483647, %v1314_v0 }
 0x16f   :  { %1664 = vmatpush.msrb.mxu1 %v1610_v39  ;;  %v1286_v25 = vmax.f32 %v1222_v16, 0.0  ;;  %v1155_v31 = vand.u32 2147483647, %v1091_v45  ;;  %v1416_v6 = vand.u32 2147483647, %v1352_v33  ;;  %v1054_v26 = vsub.f32 %v3163_v19, %v3129_v23 }
 0x170   :  { %v1573_v8 = vmul.f32 %v1509_v43, %v1248_v60  ;;  %v1547_v52 = vmax.f32 %v1483_v7, 0.0  ;;  %v1245_v49 = vmax.f32 %v1181_v28, 0.0  ;;  %v1442_v22 = vsub.f32 1.0, %v1378_v37 }
 0x171   :  { %v1219_v40 = vsub.f32 1.0, %v1155_v31  ;;  %v1480_v41 = vsub.f32 1.0, %v1416_v6  ;;  %v1118_v62 = vand.u32 2147483647, %v1054_v26  ;;  %v1315_v38 = vsub.f32 %v2625_v56, %v2223_v50 }
 0x172   :  { %1687 = vmatpush.msrb.mxu2 %v1573_v8  ;;  %v1611_v5 = vmul.f32 %v1547_v52, %v1286_v25  ;;  %v1506_v58 = vmax.f32 %v1442_v22, 0.0  ;;  %v1092_v48 = vsub.f32 %v3164_v35, %v3129_v23  ;;  %v1353_v15 = vsub.f32 %v3165_v34, %v2223_v50  ;;  %v3170_v52 = vld [vmem:[#allocation16_spill] sm:$0xff] }
 0x173   :  { %v1283_v59 = vmax.f32 %v1219_v40, 0.0  ;;  %v1544_v27 = vmax.f32 %v1480_v41, 0.0  ;;  %v1182_v13 = vsub.f32 1.0, %v1118_v62  ;;  %v1379_v56 = vand.u32 2147483647, %v1315_v38 }
 0x174   :  { %1704 = vmatpush.msrb.mxu3 %v1611_v5  ;;  %v1570_v14 = vmul.f32 %v1506_v58, %v1245_v49  ;;  %v1156_v47 = vand.u32 2147483647, %v1092_v48  ;;  %v1417_v55 = vand.u32 2147483647, %v1353_v15  ;;  %v1051_v2 = vsub.f32 %v3166_v18, %v3124_v30  ;;  %v3171_v5 = vld [vmem:[#allocation47_spill] sm:$0xff] }
 0x175   :  { %v1608_v57 = vmul.f32 %v1544_v27, %v1283_v59  ;;  %v1246_v1 = vmax.f32 %v1182_v13, 0.0  ;;  %v1443_v17 = vsub.f32 1.0, %v1379_v56  ;;  %v1312_v29 = vsub.f32 %v3167_v51, %v2221_v21  ;;  %v3172_v59 = vld [vmem:[#allocation27_spill] sm:$0xff]  ;;  %v3173_v13 = vld [vmem:[#allocation72_spill] sm:$0xff] }
 0x176   :  { %1648 = vmatpush.msrb.mxu0 %v1570_v14  ;;  %v1220_v24 = vsub.f32 1.0, %v1156_v47  ;;  %v1481_v46 = vsub.f32 1.0, %v1417_v55  ;;  %v1115_v61 = vand.u32 2147483647, %v1051_v2  ;;  %v1089_v19 = vsub.f32 %v3168_v20, %v3124_v30 }
 0x177   :  { %1665 = vmatpush.msrb.mxu1 %v1608_v57  ;;  %v1507_v3 = vmax.f32 %v1443_v17, 0.0  ;;  %v1376_v12 = vand.u32 2147483647, %v1312_v29  ;;  %v1350_v60 = vsub.f32 %v3169_v54, %v2221_v21  ;;  %v1052_v9 = vsub.f32 %v3166_v18, %v3129_v23 }
 0x178   :  { %v1284_v36 = vmax.f32 %v1220_v24, 0.0  ;;  %v1545_v53 = vmax.f32 %v1481_v46, 0.0  ;;  %v1179_v11 = vsub.f32 1.0, %v1115_v61  ;;  %v1153_v0 = vand.u32 2147483647, %v1089_v19 }
 0x179   :  { %v1571_v39 = vmul.f32 %v1507_v3, %v1246_v1  ;;  %v1440_v16 = vsub.f32 1.0, %v1376_v12  ;;  %v1414_v35 = vand.u32 2147483647, %v1350_v60  ;;  %v1116_v45 = vand.u32 2147483647, %v1052_v9 }
 0x17a   :  { %v1609_v34 = vmul.f32 %v1545_v53, %v1284_v36  ;;  %v1243_v33 = vmax.f32 %v1179_v11, 0.0  ;;  %v1217_v43 = vsub.f32 1.0, %v1153_v0  ;;  %v1313_v7 = vsub.f32 %v3167_v51, %v2223_v50 }
 0x17b   :  { %1688 = vmatpush.msrb.mxu2 %v1571_v39  ;;  %v1504_v28 = vmax.f32 %v1440_v16, 0.0  ;;  %v1478_v37 = vsub.f32 1.0, %v1414_v35  ;;  %v1180_v25 = vsub.f32 1.0, %v1116_v45  ;;  %v1090_v31 = vsub.f32 %v3168_v20, %v3129_v23  ;;  %v3174_v45 = vld [vmem:[#allocation10_spill] sm:$0xff] }
 0x17c   :  { %1705 = vmatpush.msrb.mxu3 %v1609_v34  ;;  %v1281_v6 = vmax.f32 %v1217_v43, 0.0  ;;  %v1377_v26 = vand.u32 2147483647, %v1313_v7  ;;  %v1351_v8 = vsub.f32 %v3169_v54, %v2223_v50  ;;  %v1049_v49 = vsub.f32 %v3170_v52, %v3124_v30 }
 0x17d   :  { %v1568_v22 = vmul.f32 %v1504_v28, %v1243_v33  ;;  %v1542_v42 = vmax.f32 %v1478_v37, 0.0  ;;  %v1244_v40 = vmax.f32 %v1180_v25, 0.0  ;;  %v1154_v41 = vand.u32 2147483647, %v1090_v31 }
 0x17e   :  { %v1441_v62 = vsub.f32 1.0, %v1377_v26  ;;  %v1415_v38 = vand.u32 2147483647, %v1351_v8  ;;  %v1113_v4 = vand.u32 2147483647, %v1049_v49  ;;  %v1310_v58 = vsub.f32 %v3171_v5, %v2221_v21  ;;  %v3176_v49 = vld [vmem:[#allocation40_spill] sm:$0xff] }
 0x17f   :  { %1649 = vmatpush.msrb.mxu0 %v1568_v22  ;;  %v1606_v48 = vmul.f32 %v1542_v42, %v1281_v6  ;;  %v1218_v15 = vsub.f32 1.0, %v1154_v41  ;;  %v1087_v27 = vsub.f32 %v3172_v59, %v3124_v30  ;;  %v1348_v56 = vsub.f32 %v3173_v13, %v2221_v21  ;;  %v3175_v6 = vld [vmem:[#allocation44_spill] sm:$0xff] }
 0x180   :  { %v1505_v14 = vmax.f32 %v1441_v62, 0.0  ;;  %v1479_v47 = vsub.f32 1.0, %v1415_v38  ;;  %v1177_v55 = vsub.f32 1.0, %v1113_v4  ;;  %v1374_v18 = vand.u32 2147483647, %v1310_v58 }
 0x181   :  { %1666 = vmatpush.msrb.mxu1 %v1606_v48  ;;  %v1282_v2 = vmax.f32 %v1218_v15, 0.0  ;;  %v1151_v57 = vand.u32 2147483647, %v1087_v27  ;;  %v1412_v1 = vand.u32 2147483647, %v1348_v56  ;;  %v1050_v17 = vsub.f32 %v3170_v52, %v3129_v23 }
 0x182   :  { %v1569_v51 = vmul.f32 %v1505_v14, %v1244_v40  ;;  %v1543_v29 = vmax.f32 %v1479_v47, 0.0  ;;  %v1241_v24 = vmax.f32 %v1177_v55, 0.0  ;;  %v1438_v46 = vsub.f32 1.0, %v1374_v18 }
 0x183   :  { %v1215_v61 = vsub.f32 1.0, %v1151_v57  ;;  %v1476_v20 = vsub.f32 1.0, %v1412_v1  ;;  %v1114_v19 = vand.u32 2147483647, %v1050_v17  ;;  %v1311_v3 = vsub.f32 %v3171_v5, %v2223_v50  ;;  %v3177_v57 = vld [vmem:[#allocation45_spill] sm:$0xff] }
 0x184   :  { %1689 = vmatpush.msrb.mxu2 %v1569_v51  ;;  %v1607_v12 = vmul.f32 %v1543_v29, %v1282_v2  ;;  %v1502_v54 = vmax.f32 %v1438_v46, 0.0  ;;  %v1088_v60 = vsub.f32 %v3172_v59, %v3129_v23  ;;  %v1349_v9 = vsub.f32 %v3173_v13, %v2223_v50  ;;  %v3178_v29 = vld [vmem:[#allocation41_spill] sm:$0xff] }
 0x185   :  { %v1279_v36 = vmax.f32 %v1215_v61, 0.0  ;;  %v1540_v53 = vmax.f32 %v1476_v20, 0.0  ;;  %v1178_v11 = vsub.f32 1.0, %v1114_v19  ;;  %v1375_v0 = vand.u32 2147483647, %v1311_v3 }
 0x186   :  { %1706 = vmatpush.msrb.mxu3 %v1607_v12  ;;  %v1566_v39 = vmul.f32 %v1502_v54, %v1241_v24  ;;  %v1152_v16 = vand.u32 2147483647, %v1088_v60  ;;  %v1413_v35 = vand.u32 2147483647, %v1349_v9  ;;  %v1047_v34 = vsub.f32 %v3174_v45, %v3124_v30 }
 0x187   :  { %v1604_v33 = vmul.f32 %v1540_v53, %v1279_v36  ;;  %v1242_v43 = vmax.f32 %v1178_v11, 0.0  ;;  %v1439_v7 = vsub.f32 1.0, %v1375_v0  ;;  %v1436_v28 = vsub.f32 1.0, %v2692_v10 }
 0x188   :  { %1650 = vmatpush.msrb.mxu0 %v1566_v39  ;;  %v1216_v37 = vsub.f32 1.0, %v1152_v16  ;;  %v1477_v25 = vsub.f32 1.0, %v1413_v35  ;;  %v1111_v31 = vand.u32 2147483647, %v1047_v34  ;;  %v1085_v26 = vsub.f32 %v3175_v6, %v3124_v30  ;;  %v3179_v39 = vld [vmem:[#allocation18_spill] sm:$0xff]  ;;  %v3180_v35 = vld [vmem:[#allocation69_spill] sm:$0xff] }
 0x189   :  { %1667 = vmatpush.msrb.mxu1 %v1604_v33  ;;  %v1503_v8 = vmax.f32 %v1439_v7, 0.0  ;;  %v1500_v52 = vmax.f32 %v1436_v28, 0.0  ;;  %v1346_v22 = vsub.f32 %v3176_v49, %v2221_v21  ;;  %v1048_v42 = vsub.f32 %v3174_v45, %v3129_v23 }
 0x18a   :  { %v1280_v40 = vmax.f32 %v1216_v37, 0.0  ;;  %v1541_v41 = vmax.f32 %v1477_v25, 0.0  ;;  %v1175_v62 = vsub.f32 1.0, %v1111_v31  ;;  %v1149_v10 = vand.u32 2147483647, %v1085_v26 }
 0x18b   :  { %v1567_v38 = vmul.f32 %v1503_v8, %v1242_v43  ;;  %v1410_v4 = vand.u32 2147483647, %v1346_v22  ;;  %v1112_v5 = vand.u32 2147483647, %v1048_v42  ;;  %v1437_v58 = vsub.f32 1.0, %v2696_v44  ;;  %v3181_v8 = vld [vmem:[#allocation71_spill] sm:$0xff] }
 0x18c   :  { %v1605_v48 = vmul.f32 %v1541_v41, %v1280_v40  ;;  %v1239_v15 = vmax.f32 %v1175_v62, 0.0  ;;  %v1213_v59 = vsub.f32 1.0, %v1149_v10  ;;  %v1086_v27 = vsub.f32 %v3175_v6, %v3129_v23  ;;  %v3182_v42 = vld [vmem:[#allocation43_spill] sm:$0xff] }
 0x18d   :  { %1690 = vmatpush.msrb.mxu2 %v1567_v38  ;;  %v1474_v13 = vsub.f32 1.0, %v1410_v4  ;;  %v1176_v56 = vsub.f32 1.0, %v1112_v5  ;;  %v1501_v14 = vmax.f32 %v1437_v58, 0.0  ;;  %v1347_v47 = vsub.f32 %v3176_v49, %v2223_v50  ;;  %v1628_v62 = vld [vmem:[%s2953_s2] sm:$0xf0] }
 0x18e   :  { %1707 = vmatpush.msrb.mxu3 %v1605_v48  ;;  %v1564_v55 = vmul.f32 %v1500_v52, %v1239_v15  ;;  %v1277_v18 = vmax.f32 %v1213_v59, 0.0  ;;  %v1150_v2 = vand.u32 2147483647, %v1086_v27  ;;  %v1083_v44 = vsub.f32 %v3177_v57, %v3124_v30 }
 0x18f   :  { %v1538_v1 = vmax.f32 %v1474_v13, 0.0  ;;  %v1240_v17 = vmax.f32 %v1176_v56, 0.0  ;;  %v1411_v51 = vand.u32 2147483647, %v1347_v47  ;;  %v1344_v24 = vsub.f32 %v3178_v29, %v2221_v21 }
 0x190   :  { %1651 = vmatpush.msrb.mxu0 %v1564_v55  ;;  %v1214_v46 = vsub.f32 1.0, %v1150_v2  ;;  %v1147_v61 = vand.u32 2147483647, %v1083_v44  ;;  %v1084_v20 = vsub.f32 %v3177_v57, %v3129_v23  ;;  %v1345_v19 = vsub.f32 %v3178_v29, %v2223_v50 }
 0x191   :  { %v1602_v3 = vmul.f32 %v1538_v1, %v1277_v18  ;;  %v1565_v12 = vmul.f32 %v1501_v14, %v1240_v17  ;;  %v1475_v54 = vsub.f32 1.0, %v1411_v51  ;;  %v1408_v60 = vand.u32 2147483647, %v1344_v24 }
 0x192   :  { %v1278_v9 = vmax.f32 %v1214_v46, 0.0  ;;  %v1211_v36 = vsub.f32 1.0, %v1147_v61  ;;  %v1148_v53 = vand.u32 2147483647, %v1084_v20  ;;  %v1409_v11 = vand.u32 2147483647, %v1345_v19 }
 0x193   :  { %1668 = vmatpush.msrb.mxu1 %v1602_v3  ;;  %1691 = vmatpush.msrb.mxu2 %v1565_v12  ;;  %v1539_v21 = vmax.f32 %v1475_v54, 0.0  ;;  %v1472_v0 = vsub.f32 1.0, %v1408_v60  ;;  %v1081_v16 = vsub.f32 %v3179_v39, %v3124_v30  ;;  %v1470_v45 = vsub.f32 1.0, %v3180_v35 }
 0x194   :  { %v1275_v34 = vmax.f32 %v1211_v36, 0.0  ;;  %v1212_v33 = vsub.f32 1.0, %v1148_v53  ;;  %v1473_v50 = vsub.f32 1.0, %v1409_v11  ;;  %v1082_v43 = vsub.f32 %v3179_v39, %v3129_v23 }
 0x195   :  { %v1603_v7 = vmul.f32 %v1539_v21, %v1278_v9  ;;  %v1536_v28 = vmax.f32 %v1472_v0, 0.0  ;;  %v1145_v37 = vand.u32 2147483647, %v1081_v16  ;;  %v1534_v25 = vmax.f32 %v1470_v45, 0.0 }
 0x196   :  { %v1276_v31 = vmax.f32 %v1212_v33, 0.0  ;;  %v1537_v6 = vmax.f32 %v1473_v50, 0.0  ;;  %v1146_v26 = vand.u32 2147483647, %v1082_v43  ;;  %v1471_v52 = vsub.f32 1.0, %v3181_v8 }
 0x197   :  { %1708 = vmatpush.msrb.mxu3 %v1603_v7  ;;  %v1600_v49 = vmul.f32 %v1536_v28, %v1275_v34  ;;  %v1209_v22 = vsub.f32 1.0, %v1145_v37  ;;  %v1079_v40 = vsub.f32 %v3182_v42, %v3124_v30  ;;  %v1468_v41 = vsub.f32 1.0, %v2713_v63 }
 0x198   :  { %v1601_v10 = vmul.f32 %v1537_v6, %v1276_v31  ;;  %v1210_v38 = vsub.f32 1.0, %v1146_v26  ;;  %v1535_v4 = vmax.f32 %v1471_v52, 0.0  ;;  %v1080_v5 = vsub.f32 %v3182_v42, %v3129_v23  ;;  %v1629_v23 = vld [vmem:[%s2953_s2 + $0x8] sm:$0xf0]  ;;  %s1785_s2 = smov [#allocation2]  }
 0x199   :  { %1669 = vmatpush.msrb.mxu1 %v1600_v49  ;;  %v1273_v58 = vmax.f32 %v1209_v22, 0.0  ;;  %v1143_v48 = vand.u32 2147483647, %v1079_v40  ;;  %v1469_v15 = vsub.f32 1.0, %v2715_v32  ;;  %v1632_v27 = vrot.slane %v1628_v62, 4  ;;  %s1729_s18 = sshll.u32 %s1785_s2, 4  ;;  %s1730_s18 = int_to_ptr.vmem [resolvable:$true] %s1729_s18 }
 0x19a   :  { %1709 = vmatpush.msrb.mxu3 %v1601_v10  ;;  %v1274_v59 = vmax.f32 %v1210_v38, 0.0  ;;  %v1144_v30 = vand.u32 2147483647, %v1080_v5  ;;  %v1532_v56 = vmax.f32 %v1468_v41, 0.0  ;;  %v1633_v57 = vrot.slane %v1629_v23, 4 }
 0x19b   :  { %v1598_v63 = vmul.f32 %v1534_v25, %v1273_v58  ;;  %v1207_v13 = vsub.f32 1.0, %v1143_v48  ;;  %v1533_v55 = vmax.f32 %v1469_v15, 0.0  ;;  %1692 = vmatmul.f32.vlgmr.msrb.gmra.mxu2 %v1632_v27  ;;  %1652 = vmatmul.f32.vlgmr.msrb.gmra.mxu0 %v1632_v27 }
 0x19c   :  { %v1599_v14 = vmul.f32 %v1535_v4, %v1274_v59  ;;  %v1208_v47 = vsub.f32 1.0, %v1144_v30 }
 0x19d   :  { %1670 = vmatpush.msrb.mxu1 %v1598_v63  ;;  %v1271_v18 = vmax.f32 %v1207_v13, 0.0 }
 0x19e   :  { %1710 = vmatpush.msrb.mxu3 %v1599_v14  ;;  %v1272_v32 = vmax.f32 %v1208_v47, 0.0 }
 0x19f   :  { %v1596_v2 = vmul.f32 %v1532_v56, %v1271_v18 }
 0x1a0   :  { %v1597_v44 = vmul.f32 %v1533_v55, %v1272_v32 }
 0x1a1   :  { %1671 = vmatpush.msrb.mxu1 %v1596_v2 }
 0x1a2   :  { %1711 = vmatpush.msrb.mxu3 %v1597_v44  ;;  %1672 = vmatmul.f32.vlgmr.msrb.gmra.mxu1 %v1633_v57 }
 0x1a3   :  { %1712 = vmatmul.f32.vlgmr.msrb.gmra.mxu3 %v1633_v57 }
 0x1e6   :  { %v961_v1 = vpop.f32.mrf.mxu0 }
 0x1e8   :  { %v981_v17 = vpop.f32.mrf.mxu1 }
 0x1e9   :  { %v982_v51 = vadd.f32 %v981_v17, %v961_v1 }
 0x1eb   :  { %1024 = vst [vmem:[#allocation2] sm:$0xf] %v982_v51 }
 0x1ed   :  { %v1001_v29 = vpop.f32.mrf.mxu2 }
 0x1ee   :  { %v1021_v24 = vpop.f32.mrf.mxu3 }
 0x1ef   :  { %v1022_v46 = vadd.f32 %v1021_v24, %v1001_v29 }
 0x1f1   :  { %1025 = vst [vmem:[#allocation2 + $0x8] sm:$0xf] %v1022_v46 }
 0x218   :  { %v1653_v61 = vpop.f32.mrf.mxu0 }
 0x21e   :  { %v1693_v12 = vpop.f32.mrf.mxu2 }
 0x21f   :  { %v1673_v20 = vpop.f32.mrf.mxu1 }
 0x220   :  { %v1674_v19 = vadd.f32 %v1673_v20, %v1653_v61 }
 0x222   :  { %v1718_v3 = vrot.slane %v1674_v19, 4 }
 0x224   :  { %1722 = vst [vmem:[#allocation2] sm:$0xf0] %v1718_v3 }
 0x226   :  { %v1713_v54 = vpop.f32.mrf.mxu3 }
 0x227   :  { %v1714_v60 = vadd.f32 %v1713_v54, %v1693_v12 }
 0x229   :  { %v1719_v9 = vrot.slane %v1714_v60, 4 }
 0x22b   :  { %1723 = vst [vmem:[#allocation2 + $0x8] sm:$0xf0] %v1719_v9 }
 0x22c   :  { %1734 = dma.vmem_to_hbm [thread:$0]  %s1730_s18, 256, %s1732_s21, [#allocation3]  }
 0x22d   :  { %1781 = dma.done.wait [#allocation3], 256  }
 0x22e   :  { %1782 = vsyncadd [#allocation3], 4294967040 }
 0x22f   :  { %1739 = vsyncpa [#allocation3], 1 }

</bundles_post_ra>
